<compile_context>
chip_gen: v7x
topology: tpu7x:2x2x1
jax: 0.10.0
libtpu: 0.0.40
codegen_flags: <defaults>
</compile_context>

<pallas_src>
import numpy as np

import jax
import jax.numpy as jnp
from jax.experimental import pallas as pl
from jax.experimental.pallas import tpu as pltpu


_ROW_TILE = 1024                   # rows per grid step
_SPLIT_MIN = 256                   # min rows/step when force-splitting for megacore
_VMEM_LIMIT = 32 * 1024 * 1024     # explicit scoped-VMEM budget (fits v5e/v6e/v7x)


# ----------------------------- Pallas kernels ------------------------------

def _conv_pool_kernel(x_ref, w_ref, b_ref, o_ref):
    """Fused conv-as-matmul + 2x2 maxpool + bias.

    The banded weight's 512 columns are four 128-lane groups, one per pool corner
    (h0, w0); the pool is an elementwise max of four 128-aligned slices, and the
    per-channel bias (constant across corners, so it commutes with max) is added
    after pooling.  Output is lane-dense (tm, 128); pad lanes are exactly zero.
    """
    acc = jnp.dot(x_ref[...], w_ref[...],
                  preferred_element_type=jnp.float32)            # (TM, 512) f32
    v = jnp.maximum(jnp.maximum(acc[:, 0:128], acc[:, 128:256]),
                    jnp.maximum(acc[:, 256:384], acc[:, 384:512]))
    o_ref[...] = (v + b_ref[...]).astype(o_ref.dtype)


def _tail_kernel(x_ref, w_ref, b_ref, o_ref):
    """conv3 + fc1 + fc2 folded (in prepare_params, in f32) into one matmul + bias.

    TODO(synk): dropout (dropout_prob > 0) between fc1 and fc2 is not implemented;
    it would require keeping fc1/fc2 separate and using pltpu.prng_seed /
    prng_random_bits.  The module's default prob=0.0 is an identity, matched here.
    """
    o_ref[...] = (jnp.dot(x_ref[...], w_ref[...],
                          preferred_element_type=jnp.float32)
                  + b_ref[...]).astype(o_ref.dtype)


# ----------------------------- Pallas wrapper -------------------------------

def _row_tiling(m, tile=_ROW_TILE):
    """Pick (row_tile, padded_rows).  Prefer >= 2 grid steps once there is enough
    work so the 'parallel' grid axis can shard across v7x's two TensorCores."""
    if m <= tile:
        if m >= 2 * _SPLIT_MIN:
            tm = ((m + 15) // 16) * 8        # ~m/2, rounded up to a multiple of 8
            return tm, 2 * tm
        return m, m
    mp = ((m + tile - 1) // tile) * tile
    return tile, mp


def _row_blocked_call(kernel, lhs, w, bias, out_dtype=jnp.bfloat16):
    """Rows of `lhs` tiled over a 1-D parallel grid; `w` / `bias` stay resident in
    VMEM (grid-invariant index maps).  NOTE: pipeline_mode=pl.Buffered(1) on the
    weight/bias specs would drop their redundant double-buffer; left at default."""
    lhs = lhs.astype(w.dtype)
    m, k = lhs.shape
    _, n = w.shape
    tm, mp = _row_tiling(m)
    if mp != m:
        lhs = jnp.pad(lhs, ((0, mp - m), (0, 0)))
    out = pl.pallas_call(
        kernel,
        out_shape=jax.ShapeDtypeStruct((mp, 128), out_dtype),
        grid=(mp // tm,),
        in_specs=[
            pl.BlockSpec((tm, k), lambda i: (i, 0)),     # activations: row-tiled
            pl.BlockSpec((k, n), lambda i: (0, 0)),      # banded/folded weights: resident
            pl.BlockSpec((1, 128), lambda i: (0, 0)),    # bias: resident
        ],
        out_specs=pl.BlockSpec((tm, 128), lambda i: (i, 0)),
        compiler_params=pltpu.CompilerParams(
            dimension_semantics=("parallel",),
            vmem_limit_bytes=_VMEM_LIMIT),
        cost_estimate=pl.CostEstimate(
            flops=2 * mp * k * n, transcendentals=0,
            bytes_accessed=mp * k * 2 + k * n * 2 + mp * 128 * 2 + 128 * 4),
    )(lhs, w, bias)
    return out[:m] if mp != m else out


# --------------------- one-time parameter preprocessing ---------------------

def prepare_params(p):
    """Hoisted weight re-layout: banded conv+pool weights with 128-aligned pool
    corner column groups, 128-stride row indexing for K2 (matches K1's lane-dense
    output), and the fully-affine tail folded (in f32) into one (640,128) matmul.
    Weights cast to bf16; biases stay f32 (added post-accumulation)."""
    f32 = np.float32
    w1 = np.asarray(p["conv1_w"], f32)    # (6,1,5,5)    OIHW
    b1 = np.asarray(p["conv1_b"], f32)
    w2 = np.asarray(p["conv2_w"], f32)    # (16,6,5,5)
    b2 = np.asarray(p["conv2_b"], f32)
    w3 = np.asarray(p["conv3_w"], f32)    # (120,16,5,5)
    b3 = np.asarray(p["conv3_b"], f32)
    wf1 = np.asarray(p["fc1_w"], f32)     # (84,120)  PyTorch Linear: [out, in]
    bf1 = np.asarray(p["fc1_b"], f32)
    wf2 = np.asarray(p["fc2_w"], f32)     # (10,84)
    bf2 = np.asarray(p["fc2_b"], f32)

    # K1: rows index (r, w) of the 6x32 padded-input row window feeding one pooled
    # output row; cols are 4 x 128-lane (h0,w0) corner groups, inner order
    # (pcol, cout) with 84 valid columns per group.
    W1 = np.zeros((6 * 32, 4 * 128), f32)
    for h0 in range(2):
        for w0 in range(2):
            g = (2 * h0 + w0) * 128
            for ki in range(5):
                for kj in range(5):
                    for pcol in range(14):
                        r = (h0 + ki) * 32 + 2 * pcol + w0 + kj
                        W1[r, g + pcol * 6: g + pcol * 6 + 6] += w1[:, 0, ki, kj]
    B1 = np.zeros((1, 128), f32)
    B1[0, :84] = np.tile(b1, 14)                       # col = pcol*6 + cout

    # K2: rows index r*128 + (p*6 + ci) — the 128-lane stride of K1's padded output,
    # so no repacking between kernels; cols are 4 x 128 corner groups, inner order
    # (p2, cout2) with 80 valid columns per group.  Pad rows/cols stay zero.
    W2 = np.zeros((6 * 128, 4 * 128), f32)
    for h0 in range(2):
        for w0 in range(2):
            g = (2 * h0 + w0) * 128
            for ki in range(5):
                for kj in range(5):
                    blk = w2[:, :, ki, kj].T           # (ci=6, cout2=16)
                    for p2 in range(5):
                        r0 = (h0 + ki) * 128 + (2 * p2 + w0 + kj) * 6
                        W2[r0:r0 + 6, g + p2 * 16: g + p2 * 16 + 16] += blk
    B2 = np.zeros((1, 128), f32)
    B2[0, :80] = np.tile(b2, 5)                        # col = p2*16 + cout2

    # Tail: conv3 (whole 5x5x16 window) -> fc1 -> fc2 is fully affine, so fold
    # W_tail = W3 @ Wf1^T @ Wf2^T and b_tail = (b3@Wf1^T + bf1)@Wf2^T + bf2 in f32,
    # with rows at the 128-stride of K2's lane-dense output (q2*128 + p*16 + c).
    w3m = np.zeros((5, 128, 120), f32)
    w3m[:, :80, :] = w3.transpose(2, 3, 1, 0).reshape(5, 80, 120)   # (ki, kj*16+ci, o)
    w3m = w3m.reshape(640, 120)
    Wt = w3m @ wf1.T @ wf2.T                           # (640, 10) f32
    bt = (b3 @ wf1.T + bf1) @ wf2.T + bf2              # (10,)
    WT = np.zeros((640, 128), f32); WT[:, :10] = Wt
    BT = np.zeros((1, 128), f32);   BT[0, :10] = bt

    bf16 = jnp.bfloat16
    return {
        "W1": jnp.asarray(W1, bf16), "b1": jnp.asarray(B1, jnp.float32),
        "W2": jnp.asarray(W2, bf16), "b2": jnp.asarray(B2, jnp.float32),
        "Wt": jnp.asarray(WT, bf16), "bt": jnp.asarray(BT, jnp.float32),
    }


# ----------------------------- LeNet5 forward -------------------------------

def init_params(key):
    """Deterministic synthetic parameters with the PyTorch module's shapes."""
    ks = jax.random.split(key, 10)

    def nrm(k, shape, scale):
        return (scale * jax.random.normal(k, shape)).astype(jnp.float32)

    return {
        "conv1_w": nrm(ks[0], (6, 1, 5, 5), 0.2),
        "conv1_b": nrm(ks[1], (6,), 0.1),
        "conv2_w": nrm(ks[2], (16, 6, 5, 5), 0.1),
        "conv2_b": nrm(ks[3], (16,), 0.1),
        "conv3_w": nrm(ks[4], (120, 16, 5, 5), 0.05),
        "conv3_b": nrm(ks[5], (120,), 0.1),
        "fc1_w": nrm(ks[6], (84, 120), 0.1),   # PyTorch Linear: [out, in]
        "fc1_b": nrm(ks[7], (84,), 0.1),
        "fc2_w": nrm(ks[8], (10, 84), 0.1),
        "fc2_b": nrm(ks[9], (10,), 0.1),
    }


def lenet5_forward(x, pp):
    """x: [B, 28, 28] float32 -> logits [B, 10]. Mirrors LeNet5.forward
    (no nonlinearities; dropout_prob=0.0 -> identity)."""
    h = x.reshape(-1, 28, 28).astype(jnp.float32)           # view(-1, 1, 28, 28)
    B = h.shape[0]

    # conv1 (pad=2) + pool1: row-collect the 6 overlapping padded-image rows that
    # feed each pooled output row (~2.6x the image bytes vs 19x full im2col).
    # TODO(synk): lhs1/lhs2 row-collection is still an XLA op through HBM; moving it
    # in-kernel (batch-gridded, VMEM scratch) would remove those round trips but
    # needs in-kernel strided relayouts not exercised here.
    xp = jnp.pad(h, ((0, 0), (2, 2), (2, 2))).astype(jnp.bfloat16)          # (B,32,32)
    lhs1 = jnp.stack([xp[:, r:r + 28:2, :] for r in range(6)], axis=2)      # (B,14,6,32)
    lhs1 = lhs1.reshape(B * 14, 6 * 32)
    p1 = _row_blocked_call(_conv_pool_kernel, lhs1, pp["W1"], pp["b1"])     # (B*14,128)
    p1 = p1.reshape(B, 14, 128)     # lane-dense: 84 valid (pcol,cout) cols + 44 zeros

    # conv2 (valid) + pool2: 6 overlapping p1 rows per pooled row, kept at the
    # 128-lane stride of K1's output (W2's rows use the same indexing, so the zero
    # pad lanes hit zero weight rows — no repacking or slicing needed).
    lhs2 = jnp.stack([p1[:, r:r + 9:2, :] for r in range(6)], axis=2)       # (B,5,6,128)
    lhs2 = lhs2.reshape(B * 5, 6 * 128)
    p2 = _row_blocked_call(_conv_pool_kernel, lhs2, pp["W2"], pp["b2"])     # (B*5,128)

    # conv3's 5x5x16 window is the whole map and conv3 -> fc1 -> fc2 is affine,
    # so the tail is one matmul against the pre-folded (640,128) weight.
    xt = p2.reshape(B, 5 * 128)                                             # .squeeze()
    logits = _row_blocked_call(_tail_kernel, xt, pp["Wt"], pp["bt"])        # (B,128) bf16
    return logits[:, :10].astype(jnp.float32)


# ----------------------------- Reference check ------------------------------

def reference_forward(x, p):
    xi = x.reshape(-1, 1, 28, 28).astype(jnp.float32)
    B = xi.shape[0]

    def conv(y, w, b, pad):
        z = jax.lax.conv_general_dilated(
            y, w, (1, 1), [(pad, pad), (pad, pad)],
            dimension_numbers=("NCHW", "OIHW", "NCHW"))
        return z + b[None, :, None, None]

    def pool(y):
        return jax.lax.reduce_window(
            y, -jnp.inf, jax.lax.max, (1, 1, 2, 2), (1, 1, 2, 2), "VALID")

    h = pool(conv(xi, p["conv1_w"], p["conv1_b"], 2))
    h = pool(conv(h, p["conv2_w"], p["conv2_b"], 0))
    h = conv(h, p["conv3_w"], p["conv3_b"], 0).reshape(B, 120)
    h = h @ p["fc1_w"].T + p["fc1_b"]
    return h @ p["fc2_w"].T + p["fc2_b"]


# ----------------------------------- main ------------------------------------

if __name__ == "__main__":
    key = jax.random.PRNGKey(0)
    k_x, k_p = jax.random.split(key)
    batch = 2
    x = jax.random.normal(k_x, (batch, 28, 28), dtype=jnp.float32)
    params = init_params(k_p)
    pp = prepare_params(params)          # hoisted, one-time weight re-layout / folding

    fwd = jax.jit(lenet5_forward)
    out = jax.block_until_ready(fwd(x, pp))
    assert out.shape == (batch, 10), out.shape

    ref = jax.block_until_ready(reference_forward(x, params))
    # bf16 kernel boundaries with f32 MXU accumulation vs an all-f32 reference:
    # allow ~1e-1 slack (a layout/indexing bug would produce O(1) errors).
    if not jnp.allclose(out, ref, atol=1e-1, rtol=1e-1):
        max_err = float(jnp.max(jnp.abs(out - ref)))
        raise AssertionError(f"Pallas LeNet5 mismatch vs reference (max err {max_err})")

    print("KERNEL_OK")
</pallas_src>

<mosaic_0001>
module attributes {stable_mosaic.version = 11 : i64} {
  func.func @_conv_pool_kernel(%arg0: i32, %arg1: memref<28x192xbf16, #tpu.memory_space<vmem>>, %arg2: memref<192x512xbf16, #tpu.memory_space<vmem>>, %arg3: memref<1x128xf32, #tpu.memory_space<vmem>>, %arg4: memref<28x128xbf16, #tpu.memory_space<vmem>>) attributes {dimension_semantics = [#tpu.dimension_semantics<parallel>], iteration_bounds = array<i64: 1>, scalar_prefetch = 0 : i64, scratch_operands = 0 : i64, tpu.core_type = #tpu.core_type<tc>, window_params = [{transform_indices = @transform_0, window_bounds = array<i64: 28, 192>}, {pipeline_mode = #tpu.pipeline_mode<synchronous>, transform_indices = @transform_1, window_bounds = array<i64: 192, 512>}, {pipeline_mode = #tpu.pipeline_mode<synchronous>, transform_indices = @transform_2, window_bounds = array<i64: 1, 128>}, {transform_indices = @transform_3, window_bounds = array<i64: 28, 128>}]} {
    %c0 = arith.constant 0 : index
    %c0_0 = arith.constant 0 : index
    %0 = vector.load %arg1[%c0, %c0_0] : memref<28x192xbf16, #tpu.memory_space<vmem>>, vector<28x192xbf16>
    %c0_1 = arith.constant 0 : index
    %c0_2 = arith.constant 0 : index
    %1 = vector.load %arg2[%c0_1, %c0_2] : memref<192x512xbf16, #tpu.memory_space<vmem>>, vector<192x512xbf16>
    %cst = arith.constant dense<0.000000e+00> : vector<28x512xf32>
    %2 = tpu.matmul %0, %1, %cst {dimension_numbers = #tpu.dot_dimension_numbers<[1], [0], [0], [1], [0, 0, 1, 1], [], []>} : vector<28x192xbf16>, vector<192x512xbf16>, vector<28x512xf32> -> vector<28x512xf32>
    %3 = vector.extract_strided_slice %2 {offsets = [0, 0], sizes = [28, 128], strides = [1, 1]} : vector<28x512xf32> to vector<28x128xf32>
    %4 = vector.extract_strided_slice %2 {offsets = [0, 128], sizes = [28, 128], strides = [1, 1]} : vector<28x512xf32> to vector<28x128xf32>
    %5 = arith.maximumf %3, %4 : vector<28x128xf32>
    %6 = vector.extract_strided_slice %2 {offsets = [0, 256], sizes = [28, 128], strides = [1, 1]} : vector<28x512xf32> to vector<28x128xf32>
    %7 = vector.extract_strided_slice %2 {offsets = [0, 384], sizes = [28, 128], strides = [1, 1]} : vector<28x512xf32> to vector<28x128xf32>
    %8 = arith.maximumf %6, %7 : vector<28x128xf32>
    %9 = arith.maximumf %5, %8 : vector<28x128xf32>
    %c0_3 = arith.constant 0 : index
    %c0_4 = arith.constant 0 : index
    %10 = vector.load %arg3[%c0_3, %c0_4] : memref<1x128xf32, #tpu.memory_space<vmem>>, vector<1x128xf32>
    %11 = vector.broadcast %10 : vector<1x128xf32> to vector<28x128xf32>
    %12 = arith.addf %9, %11 : vector<28x128xf32>
    %13 = arith.truncf %12 : vector<28x128xf32> to vector<28x128xbf16>
    %c0_5 = arith.constant 0 : index
    %c0_6 = arith.constant 0 : index
    %14 = vector.load %arg4[%c0_5, %c0_6] : memref<28x128xbf16, #tpu.memory_space<vmem>>, vector<28x128xbf16>
    tpu.vector_store %arg4[%c0_5, %c0_6], %13 {strides = array<i32>} : memref<28x128xbf16, #tpu.memory_space<vmem>>, vector<28x128xbf16>,
    return
  }
  func.func @transform_0(%arg0: i32) -> (i32, i32) {
    %c0_i32 = arith.constant 0 : i32
    %c0_i32_0 = arith.constant 0 : i32
    return %arg0, %c0_i32 : i32, i32
  }
  func.func @transform_1(%arg0: i32) -> (i32, i32) {
    %c0_i32 = arith.constant 0 : i32
    %c0_i32_0 = arith.constant 0 : i32
    %c0_i32_1 = arith.constant 0 : i32
    return %c0_i32, %c0_i32_0 : i32, i32
  }
  func.func @transform_2(%arg0: i32) -> (i32, i32) {
    %c0_i32 = arith.constant 0 : i32
    %c0_i32_0 = arith.constant 0 : i32
    %c0_i32_1 = arith.constant 0 : i32
    return %c0_i32, %c0_i32_0 : i32, i32
  }
  func.func @transform_3(%arg0: i32) -> (i32, i32) {
    %c0_i32 = arith.constant 0 : i32
    %c0_i32_0 = arith.constant 0 : i32
    return %arg0, %c0_i32 : i32, i32
  }
}

module attributes {stable_mosaic.version = 11 : i64} {
  func.func @_tail_kernel(%arg0: i32, %arg1: memref<2x640xbf16, #tpu.memory_space<vmem>>, %arg2: memref<640x128xbf16, #tpu.memory_space<vmem>>, %arg3: memref<1x128xf32, #tpu.memory_space<vmem>>, %arg4: memref<2x128xbf16, #tpu.memory_space<vmem>>) attributes {dimension_semantics = [#tpu.dimension_semantics<parallel>], iteration_bounds = array<i64: 1>, scalar_prefetch = 0 : i64, scratch_operands = 0 : i64, tpu.core_type = #tpu.core_type<tc>, window_params = [{transform_indices = @transform_0, window_bounds = array<i64: 2, 640>}, {pipeline_mode = #tpu.pipeline_mode<synchronous>, transform_indices = @transform_1, window_bounds = array<i64: 640, 128>}, {pipeline_mode = #tpu.pipeline_mode<synchronous>, transform_indices = @transform_2, window_bounds = array<i64: 1, 128>}, {transform_indices = @transform_3, window_bounds = array<i64: 2, 128>}]} {
    %c0 = arith.constant 0 : index
    %c0_0 = arith.constant 0 : index
    %0 = vector.load %arg1[%c0, %c0_0] : memref<2x640xbf16, #tpu.memory_space<vmem>>, vector<2x640xbf16>
    %c0_1 = arith.constant 0 : index
    %c0_2 = arith.constant 0 : index
    %1 = vector.load %arg2[%c0_1, %c0_2] : memref<640x128xbf16, #tpu.memory_space<vmem>>, vector<640x128xbf16>
    %cst = arith.constant dense<0.000000e+00> : vector<2x128xf32>
    %2 = tpu.matmul %0, %1, %cst {dimension_numbers = #tpu.dot_dimension_numbers<[1], [0], [0], [1], [0, 0, 1, 1], [], []>} : vector<2x640xbf16>, vector<640x128xbf16>, vector<2x128xf32> -> vector<2x128xf32>
    %c0_3 = arith.constant 0 : index
    %c0_4 = arith.constant 0 : index
    %3 = vector.load %arg3[%c0_3, %c0_4] : memref<1x128xf32, #tpu.memory_space<vmem>>, vector<1x128xf32>
    %4 = vector.broadcast %3 : vector<1x128xf32> to vector<2x128xf32>
    %5 = arith.addf %2, %4 : vector<2x128xf32>
    %6 = arith.truncf %5 : vector<2x128xf32> to vector<2x128xbf16>
    %c0_5 = arith.constant 0 : index
    %c0_6 = arith.constant 0 : index
    %7 = vector.load %arg4[%c0_5, %c0_6] : memref<2x128xbf16, #tpu.memory_space<vmem>>, vector<2x128xbf16>
    tpu.vector_store %arg4[%c0_5, %c0_6], %6 {strides = array<i32>} : memref<2x128xbf16, #tpu.memory_space<vmem>>, vector<2x128xbf16>,
    return
  }
  func.func @transform_0(%arg0: i32) -> (i32, i32) {
    %c0_i32 = arith.constant 0 : i32
    %c0_i32_0 = arith.constant 0 : i32
    return %arg0, %c0_i32 : i32, i32
  }
  func.func @transform_1(%arg0: i32) -> (i32, i32) {
    %c0_i32 = arith.constant 0 : i32
    %c0_i32_0 = arith.constant 0 : i32
    %c0_i32_1 = arith.constant 0 : i32
    return %c0_i32, %c0_i32_0 : i32, i32
  }
  func.func @transform_2(%arg0: i32) -> (i32, i32) {
    %c0_i32 = arith.constant 0 : i32
    %c0_i32_0 = arith.constant 0 : i32
    %c0_i32_1 = arith.constant 0 : i32
    return %c0_i32, %c0_i32_0 : i32, i32
  }
  func.func @transform_3(%arg0: i32) -> (i32, i32) {
    %c0_i32 = arith.constant 0 : i32
    %c0_i32_0 = arith.constant 0 : i32
    return %arg0, %c0_i32 : i32, i32
  }
}

module attributes {stable_mosaic.version = 11 : i64} {
  func.func @_conv_pool_kernel(%arg0: i32, %arg1: memref<10x768xbf16, #tpu.memory_space<vmem>>, %arg2: memref<768x512xbf16, #tpu.memory_space<vmem>>, %arg3: memref<1x128xf32, #tpu.memory_space<vmem>>, %arg4: memref<10x128xbf16, #tpu.memory_space<vmem>>) attributes {dimension_semantics = [#tpu.dimension_semantics<parallel>], iteration_bounds = array<i64: 1>, scalar_prefetch = 0 : i64, scratch_operands = 0 : i64, tpu.core_type = #tpu.core_type<tc>, window_params = [{transform_indices = @transform_0, window_bounds = array<i64: 10, 768>}, {pipeline_mode = #tpu.pipeline_mode<synchronous>, transform_indices = @transform_1, window_bounds = array<i64: 768, 512>}, {pipeline_mode = #tpu.pipeline_mode<synchronous>, transform_indices = @transform_2, window_bounds = array<i64: 1, 128>}, {transform_indices = @transform_3, window_bounds = array<i64: 10, 128>}]} {
    %c0 = arith.constant 0 : index
    %c0_0 = arith.constant 0 : index
    %0 = vector.load %arg1[%c0, %c0_0] : memref<10x768xbf16, #tpu.memory_space<vmem>>, vector<10x768xbf16>
    %c0_1 = arith.constant 0 : index
    %c0_2 = arith.constant 0 : index
    %1 = vector.load %arg2[%c0_1, %c0_2] : memref<768x512xbf16, #tpu.memory_space<vmem>>, vector<768x512xbf16>
    %cst = arith.constant dense<0.000000e+00> : vector<10x512xf32>
    %2 = tpu.matmul %0, %1, %cst {dimension_numbers = #tpu.dot_dimension_numbers<[1], [0], [0], [1], [0, 0, 1, 1], [], []>} : vector<10x768xbf16>, vector<768x512xbf16>, vector<10x512xf32> -> vector<10x512xf32>
    %3 = vector.extract_strided_slice %2 {offsets = [0, 0], sizes = [10, 128], strides = [1, 1]} : vector<10x512xf32> to vector<10x128xf32>
    %4 = vector.extract_strided_slice %2 {offsets = [0, 128], sizes = [10, 128], strides = [1, 1]} : vector<10x512xf32> to vector<10x128xf32>
    %5 = arith.maximumf %3, %4 : vector<10x128xf32>
    %6 = vector.extract_strided_slice %2 {offsets = [0, 256], sizes = [10, 128], strides = [1, 1]} : vector<10x512xf32> to vector<10x128xf32>
    %7 = vector.extract_strided_slice %2 {offsets = [0, 384], sizes = [10, 128], strides = [1, 1]} : vector<10x512xf32> to vector<10x128xf32>
    %8 = arith.maximumf %6, %7 : vector<10x128xf32>
    %9 = arith.maximumf %5, %8 : vector<10x128xf32>
    %c0_3 = arith.constant 0 : index
    %c0_4 = arith.constant 0 : index
    %10 = vector.load %arg3[%c0_3, %c0_4] : memref<1x128xf32, #tpu.memory_space<vmem>>, vector<1x128xf32>
    %11 = vector.broadcast %10 : vector<1x128xf32> to vector<10x128xf32>
    %12 = arith.addf %9, %11 : vector<10x128xf32>
    %13 = arith.truncf %12 : vector<10x128xf32> to vector<10x128xbf16>
    %c0_5 = arith.constant 0 : index
    %c0_6 = arith.constant 0 : index
    %14 = vector.load %arg4[%c0_5, %c0_6] : memref<10x128xbf16, #tpu.memory_space<vmem>>, vector<10x128xbf16>
    tpu.vector_store %arg4[%c0_5, %c0_6], %13 {strides = array<i32>} : memref<10x128xbf16, #tpu.memory_space<vmem>>, vector<10x128xbf16>,
    return
  }
  func.func @transform_0(%arg0: i32) -> (i32, i32) {
    %c0_i32 = arith.constant 0 : i32
    %c0_i32_0 = arith.constant 0 : i32
    return %arg0, %c0_i32 : i32, i32
  }
  func.func @transform_1(%arg0: i32) -> (i32, i32) {
    %c0_i32 = arith.constant 0 : i32
    %c0_i32_0 = arith.constant 0 : i32
    %c0_i32_1 = arith.constant 0 : i32
    return %c0_i32, %c0_i32_0 : i32, i32
  }
  func.func @transform_2(%arg0: i32) -> (i32, i32) {
    %c0_i32 = arith.constant 0 : i32
    %c0_i32_0 = arith.constant 0 : i32
    %c0_i32_1 = arith.constant 0 : i32
    return %c0_i32, %c0_i32_0 : i32, i32
  }
  func.func @transform_3(%arg0: i32) -> (i32, i32) {
    %c0_i32 = arith.constant 0 : i32
    %c0_i32_0 = arith.constant 0 : i32
    return %arg0, %c0_i32 : i32, i32
  }
}

</mosaic_0001>

<bundles_post_ra>
// kernel: lenet5_forward.3
= control target key start
LH: loop header
LB: loop body
LE: loop exit
PB: predicated region body
PF: predicated region fallthrough
CT: control target
= control target key end

     0   :  { %8 = vsyncpa [#allocation3], 0  ;;  %s675_s12 = smov [#allocation2]   ;;  %s738_s0 = inlined_call_operand.vmem [shape: bf16[28,192], index: 0, kind: input, shape index: {}]   ;;  %s739_s1 = inlined_call_operand.hbm [shape: bf16[192,512], index: 1, kind: input, shape index: {}]   ;;  %s740_s2 = inlined_call_operand.vmem [shape: f32[1,128], index: 2, kind: input, shape index: {}]   ;;  %s741_s3 = inlined_call_operand.vmem [shape: bf16[28,128], index: 3, kind: output, shape index: {}]  }
   0x1   :  { %s16_s13 = sshll.u32 %s675_s12, 4  ;;  %s651_s16 = scalar_lea.hbm %s739_s1, 6144  ;;  %s17_s13 = int_to_ptr.vmem [resolvable:$true] %s16_s13 }
   0x2   :  { %p652_p0 = scmp.ne.s32.totalorder %s739_s1, %s651_s16  ;;  %p655_p1 = scmp.lt.u32.totalorder %s651_s16, %s739_s1 }
   0x4   :  { %p657_p2 = pnand %p655_p1, %p652_p0 }
   0x6   :  { %660 = shalt.err (!%p657_p2)
}
   0x7   :  { %s661_s21 = scalar_lea.vmem %s17_s13, 6144  ;;  %p666_p4 = scmp.lt.s32.totalorder %s17_s13, %s17_s13 }
   0x8   :  { %p662_p3 = scmp.ne.s32.totalorder %s17_s13, %s661_s21  ;;  %p667_p5 = scmp.lt.s32.totalorder %s661_s21, %s661_s21 }
   0xa   :  { %p668_p6 = por %p667_p5, %p666_p4 }
   0xc   :  { %p669_p7 = pnand %p668_p6, %p662_p3 }
   0xe   :  { %672 = shalt.err (!%p669_p7)
}
   0xf   :  { %s676_s22 = smov 256   ;;  %s677_s23 = smov 16  }
  0x10   :  { %22 = dma.hbm_to_vmem [thread:$0]  %s739_s1, 6144, %s17_s13, [#allocation3], %s676_s22, %s676_s22, %s677_s23  }
  0x11   :  { %673 = dma.done.wait [#allocation3], 6144  }
  0x12   :  { %674 = vsyncadd [#allocation3], 4294961152  ;;  %v573_v0 = vld [vmem:[#allocation2 + $0x4] ss:$16 sps:$4 sm:$0xff]   ;;  %v575_v1 = vld [vmem:[#allocation2 + $0xc] ss:$16 sps:$4 sm:$0xff]  }
  0x13   :  { %346 = vmatprep.subr.bf16.mxu0 %v573_v0  ;;  %v577_v2 = vld [vmem:[#allocation2] ss:$16 sps:$4 sm:$0xff]   ;;  %v578_v3 = vld [vmem:[#allocation2 + $0x8] ss:$16 sps:$4 sm:$0xff]   ;;  %399 = vmatprep.subr.bf16.mxu1 %v575_v1  ;;  %v579_v4 = vld [vmem:[#allocation2 + $0x24] ss:$16 sps:$4 sm:$0xff]  }
  0x14   :  { %347 = vmatpush1.bf16.msra.mxu0 %v577_v2  ;;  %400 = vmatpush1.bf16.msra.mxu1 %v578_v3  ;;  %v581_v5 = vld [vmem:[#allocation2 + $0x2c] ss:$16 sps:$4 sm:$0xff]   ;;  %v583_v6 = vld [vmem:[#allocation2 + $0x20] ss:$16 sps:$4 sm:$0xff]   ;;  %v584_v7 = vld [vmem:[#allocation2 + $0x28] ss:$16 sps:$4 sm:$0xff]  }
  0x15   :  { %348 = vmatprep.subr.bf16.mxu0 %v579_v4  ;;  %401 = vmatprep.subr.bf16.mxu1 %v581_v5  ;;  %v585_v8 = vld [vmem:[#allocation2 + $0x44] ss:$16 sps:$4 sm:$0xff]   ;;  %v587_v9 = vld [vmem:[#allocation2 + $0x4c] ss:$16 sps:$4 sm:$0xff]   ;;  %v589_v10 = vld [vmem:[#allocation2 + $0x40] ss:$16 sps:$4 sm:$0xff]  }
  0x16   :  { %v590_v11 = vld [vmem:[#allocation2 + $0x48] ss:$16 sps:$4 sm:$0xff]   ;;  %v591_v12 = vld [vmem:[#allocation2 + $0x64] ss:$16 sps:$4 sm:$0xff]   ;;  %v593_v13 = vld [vmem:[#allocation2 + $0x6c] ss:$16 sps:$4 sm:$0xff]  }
  0x17   :  { %v595_v14 = vld [vmem:[#allocation2 + $0x60] ss:$16 sps:$4 sm:$0xff]   ;;  %v596_v15 = vld [vmem:[#allocation2 + $0x68] ss:$16 sps:$4 sm:$0xff]   ;;  %v597_v16 = vld [vmem:[#allocation2 + $0x84] ss:$16 sps:$4 sm:$0xff]  }
  0x18   :  { %349 = vmatpush1.bf16.msra.mxu0 %v583_v6  ;;  %402 = vmatpush1.bf16.msra.mxu1 %v584_v7  ;;  %v599_v17 = vld [vmem:[#allocation2 + $0x8c] ss:$16 sps:$4 sm:$0xff]   ;;  %v601_v18 = vld [vmem:[#allocation2 + $0x80] ss:$16 sps:$4 sm:$0xff]   ;;  %v602_v19 = vld [vmem:[#allocation2 + $0x88] ss:$16 sps:$4 sm:$0xff]  }
  0x19   :  { %350 = vmatprep.subr.bf16.mxu0 %v585_v8  ;;  %403 = vmatprep.subr.bf16.mxu1 %v587_v9  ;;  %v603_v20 = vld [vmem:[#allocation2 + $0xa4] ss:$16 sps:$4 sm:$0xff]   ;;  %v605_v21 = vld [vmem:[#allocation2 + $0xac] ss:$16 sps:$4 sm:$0xff]   ;;  %v607_v22 = vld [vmem:[#allocation2 + $0xa0] ss:$16 sps:$4 sm:$0xff]  }
  0x1a   :  { %v608_v23 = vld [vmem:[#allocation2 + $0xa8] ss:$16 sps:$4 sm:$0xff]   ;;  %v609_v24 = vld [vmem:[#allocation2 + $0xc4] ss:$16 sps:$4 sm:$0xff]   ;;  %v611_v25 = vld [vmem:[#allocation2 + $0xcc] ss:$16 sps:$4 sm:$0xff]  }
  0x1b   :  { %v613_v26 = vld [vmem:[#allocation2 + $0xc0] ss:$16 sps:$4 sm:$0xff]   ;;  %v614_v27 = vld [vmem:[#allocation2 + $0xc8] ss:$16 sps:$4 sm:$0xff]   ;;  %v615_v28 = vld [vmem:[#allocation2 + $0xe4] ss:$16 sps:$4 sm:$0xff]  }
  0x1c   :  { %351 = vmatpush1.bf16.msra.mxu0 %v589_v10  ;;  %404 = vmatpush1.bf16.msra.mxu1 %v590_v11  ;;  %v617_v29 = vld [vmem:[#allocation2 + $0xec] ss:$16 sps:$4 sm:$0xff]   ;;  %v619_v30 = vld [vmem:[#allocation2 + $0xe0] ss:$16 sps:$4 sm:$0xff]   ;;  %v620_v31 = vld [vmem:[#allocation2 + $0xe8] ss:$16 sps:$4 sm:$0xff]  }
  0x1d   :  { %352 = vmatprep.subr.bf16.mxu0 %v591_v12  ;;  %405 = vmatprep.subr.bf16.mxu1 %v593_v13  ;;  %v621_v32 = vld [vmem:[#allocation2 + $0x104] ss:$16 sps:$4 sm:$0xff]   ;;  %v623_v33 = vld [vmem:[#allocation2 + $0x10c] ss:$16 sps:$4 sm:$0xff]   ;;  %v625_v34 = vld [vmem:[#allocation2 + $0x100] ss:$16 sps:$4 sm:$0xff]  }
  0x1e   :  { %v626_v35 = vld [vmem:[#allocation2 + $0x108] ss:$16 sps:$4 sm:$0xff]   ;;  %v627_v36 = vld [vmem:[#allocation2 + $0x124] ss:$16 sps:$4 sm:$0xff]   ;;  %v629_v37 = vld [vmem:[#allocation2 + $0x12c] ss:$16 sps:$4 sm:$0xff]  }
  0x1f   :  { %vm339_vm0 = vcmask 523264   ;;  %v647_v38 = vld [vmem:[%s738_s0 + $0x4] ss:$8 sps:$4 sm:$0xff]   ;;  %v631_v39 = vld [vmem:[#allocation2 + $0x120] ss:$16 sps:$4 sm:$0xff]  }
  0x20   :  { %353 = vmatpush1.bf16.msra.mxu0 %v595_v14  ;;  %406 = vmatpush1.bf16.msra.mxu1 %v596_v15  ;;  %v632_v40 = vld [vmem:[#allocation2 + $0x128] ss:$16 sps:$4 sm:$0xff]   ;;  %v633_v41 = vld [vmem:[#allocation2 + $0x144] ss:$16 sps:$4 sm:$0xff]   ;;  %v635_v42 = vld [vmem:[#allocation2 + $0x14c] ss:$16 sps:$4 sm:$0xff]  }
  0x21   :  { %354 = vmatprep.subr.bf16.mxu0 %v597_v16  ;;  %407 = vmatprep.subr.bf16.mxu1 %v599_v17  ;;  %v637_v43 = vld [vmem:[#allocation2 + $0x140] ss:$16 sps:$4 sm:$0xff]   ;;  %v638_v44 = vld [vmem:[#allocation2 + $0x148] ss:$16 sps:$4 sm:$0xff]   ;;  %v639_v45 = vld [vmem:[#allocation2 + $0x164] ss:$16 sps:$4 sm:$0xff]  }
  0x22   :  { %552 = vmatprep.mubr.msk.bf16.mxu0 %vm339_vm0, %v647_v38  ;;  %554 = vmatprep.mubr.msk.bf16.mxu1 %vm339_vm0, %v647_v38  ;;  %v641_v46 = vld [vmem:[#allocation2 + $0x16c] ss:$16 sps:$4 sm:$0xff]   ;;  %v643_v47 = vld [vmem:[#allocation2 + $0x160] ss:$16 sps:$4 sm:$0xff]   ;;  %v644_v48 = vld [vmem:[#allocation2 + $0x168] ss:$16 sps:$4 sm:$0xff]  }
  0x23   :  { %v645_v49 = vld [vmem:[%s738_s0] ss:$8 sps:$4 sm:$0xff]   ;;  %v648_v50 = vld [vmem:[%s738_s0 + $0x14] ss:$8 sps:$4 sm:$0x3f]  }
  0x24   :  { %355 = vmatpush1.bf16.msra.mxu0 %v601_v18  ;;  %408 = vmatpush1.bf16.msra.mxu1 %v602_v19  ;;  %v650_v51 = vld [vmem:[%s738_s0 + $0x10] ss:$8 sps:$4 sm:$0x3f]   ;;  %v556_v1 = vld [vmem:[%s740_s2] ss:$0 sm:$0xff] }
  0x25   :  { %356 = vmatprep.subr.bf16.mxu0 %v603_v20  ;;  %409 = vmatprep.subr.bf16.mxu1 %v605_v21 }
  0x28   :  { %357 = vmatpush1.bf16.msra.mxu0 %v607_v22  ;;  %410 = vmatpush1.bf16.msra.mxu1 %v608_v23 }
  0x29   :  { %358 = vmatprep.subr.bf16.mxu0 %v609_v24  ;;  %411 = vmatprep.subr.bf16.mxu1 %v611_v25 }
  0x2c   :  { %359 = vmatpush1.bf16.msra.mxu0 %v613_v26  ;;  %412 = vmatpush1.bf16.msra.mxu1 %v614_v27 }
  0x2d   :  { %360 = vmatprep.subr.bf16.mxu0 %v615_v28  ;;  %413 = vmatprep.subr.bf16.mxu1 %v617_v29 }
  0x30   :  { %361 = vmatpush1.bf16.msra.mxu0 %v619_v30  ;;  %414 = vmatpush1.bf16.msra.mxu1 %v620_v31 }
  0x31   :  { %362 = vmatprep.subr.bf16.mxu0 %v621_v32  ;;  %415 = vmatprep.subr.bf16.mxu1 %v623_v33 }
  0x34   :  { %363 = vmatpush1.bf16.msra.mxu0 %v625_v34  ;;  %416 = vmatpush1.bf16.msra.mxu1 %v626_v35 }
  0x35   :  { %364 = vmatprep.subr.bf16.mxu0 %v627_v36  ;;  %417 = vmatprep.subr.bf16.mxu1 %v629_v37 }
  0x38   :  { %365 = vmatpush1.bf16.msra.mxu0 %v631_v39  ;;  %418 = vmatpush1.bf16.msra.mxu1 %v632_v40 }
  0x39   :  { %366 = vmatprep.subr.bf16.mxu0 %v633_v41  ;;  %419 = vmatprep.subr.bf16.mxu1 %v635_v42 }
  0x3c   :  { %367 = vmatpush1.bf16.msra.mxu0 %v637_v43  ;;  %420 = vmatpush1.bf16.msra.mxu1 %v638_v44 }
  0x3d   :  { %368 = vmatprep.subr.bf16.mxu0 %v639_v45  ;;  %421 = vmatprep.subr.bf16.mxu1 %v641_v46 }
  0x40   :  { %369 = vmatpush1.bf16.msra.mxu0 %v643_v47  ;;  %422 = vmatpush1.bf16.msra.mxu1 %v644_v48 }
  0x43   :  { %379 = vmatmul.mubr.bf16.vlgmr.msra.gmra.mrb[0].mxu0 %v645_v49  ;;  %432 = vmatmul.mubr.bf16.vlgmr.msra.gmra.mrb[0].mxu1 %v645_v49 }
  0x44   :  { %553 = vmatprep.mubr.msk.bf16.mxu0 %vm339_vm0, %v648_v50  ;;  %555 = vmatprep.mubr.msk.bf16.mxu1 %vm339_vm0, %v648_v50 }
  0x4b   :  { %389 = vmatmul.mubr.bf16.gmra.mrb[4].mxu0 %v650_v51  ;;  %442 = vmatmul.mubr.bf16.gmra.mrb[4].mxu1 %v650_v51 }
 0x116   :  { %v380_v52 = vpop.f32.mrb[0].mxu0  ;;  %v433_v53 = vpop.f32.mrb[0].mxu1 }
 0x117   :  { %v382_v54 = vpop.f32.mrb[1].mxu0  ;;  %v435_v55 = vpop.f32.mrb[1].mxu1 }
 0x118   :  { %v452_v56 = vmax.f32 %v380_v52, %v382_v54  ;;  %v456_v57 = vmax.f32 %v433_v53, %v435_v55  ;;  %v384_v58 = vpop.f32.mrb[2].mxu0  ;;  %v437_v59 = vpop.f32.mrb[2].mxu1 }
 0x119   :  { %v386_v60 = vpop.f32.mrb[3].mxu0  ;;  %v439_v61 = vpop.f32.mrb[3].mxu1 }
 0x11a   :  { %v460_v62 = vmax.f32 %v452_v56, %v456_v57  ;;  %v453_v63 = vmax.f32 %v384_v58, %v386_v60  ;;  %v457_v0 = vmax.f32 %v437_v59, %v439_v61 }
 0x11c   :  { %v461_v2 = vmax.f32 %v453_v63, %v457_v0  ;;  %v471_v3 = vadd.f32 %v556_v1, %v460_v62 }
 0x11e   :  { %v472_v4 = vadd.f32 %v556_v1, %v461_v2  ;;  %v390_v5 = vpop.f32.mrb[4].mxu0  ;;  %v443_v6 = vpop.f32.mrb[4].mxu1 }
 0x11f   :  { %v392_v7 = vpop.f32.mrb[5].mxu0  ;;  %v445_v8 = vpop.f32.mrb[5].mxu1 }
 0x120   :  { %v568_v9 = vpack.c.bf16 %v472_v4, %v471_v3  ;;  %v454_v10 = vmax.f32 %v390_v5, %v392_v7  ;;  %v458_v11 = vmax.f32 %v443_v6, %v445_v8  ;;  %v394_v12 = vpop.f32.mrb[6].mxu0  ;;  %v447_v13 = vpop.f32.mrb[6].mxu1 }
 0x121   :  { %v396_v14 = vpop.f32.mrb[7].mxu0  ;;  %v449_v15 = vpop.f32.mrb[7].mxu1 }
 0x122   :  { %569 = vst [vmem:[%s741_s3] sm:$0xff] %v568_v9   ;;  %v462_v16 = vmax.f32 %v454_v10, %v458_v11  ;;  %v455_v17 = vmax.f32 %v394_v12, %v396_v14  ;;  %v459_v18 = vmax.f32 %v447_v13, %v449_v15 }
 0x124   :  { %v473_v19 = vadd.f32 %v556_v1, %v462_v16  ;;  %v463_v20 = vmax.f32 %v455_v17, %v459_v18 }
 0x126   :  { %v563_v21 = vpack.c.bf16 %v473_v19, %v473_v19  ;;  %v474_v22 = vadd.f32 %v556_v1, %v463_v20 }
 0x128   :  { %493 = vst [vmem:[%s741_s3 + $0x8] sm:$0xf] %v563_v21  ;;  %v564_v23 = vpack.c.bf16 %v474_v22, %v474_v22 }
 0x12a   :  { %494 = vst [vmem:[%s741_s3 + $0xc] sm:$0x3] %v564_v23 }
 0x12b   :  { %499 = vsyncpa [#allocation3], 1 }

// kernel: lenet5_forward.5
= control target key start
LH: loop header
LB: loop body
LE: loop exit
PB: predicated region body
PF: predicated region fallthrough
CT: control target
= control target key end

     0   :  { %v672_v21 = vmov 1966171168   ;;  %v108_v23 = vlaneseq  ;;  %v673_v40 = vmov 0.0   ;;  %vm674_vm0 = vmmov 0   ;;  %s824_s1 = inlined_call_operand.vmem [shape: bf16[640,128], index: 1, kind: input, shape index: {}]   ;;  %s825_s0 = inlined_call_operand.vmem [shape: bf16[2,640], index: 0, kind: input, shape index: {}]   ;;  %s826_s2 = inlined_call_operand.vmem [shape: f32[1,128], index: 2, kind: input, shape index: {}]   ;;  %s827_s3 = inlined_call_operand.vmem [shape: bf16[2,128], index: 3, kind: output, shape index: {}]  }
   0x1   :  { %v631_v0 = vld [vmem:[%s824_s1 + $0x40] sm:$0xff]   ;;  %v635_v4 = vld [vmem:[%s824_s1 + $0x48] sm:$0xff]   ;;  %v639_v8 = vld [vmem:[%s824_s1 + $0x50] sm:$0xff]   ;;  %v106_v22 = vunpack.c.l.s4 %v672_v21 }
   0x2   :  { %v632_v1 = vld [vmem:[%s824_s1] sm:$0xff]   ;;  %555 = vmatprep.subr.bf16.mxu0 %v631_v0  ;;  %v636_v5 = vld [vmem:[%s824_s1 + $0x8] sm:$0xff]   ;;  %v640_v9 = vld [vmem:[%s824_s1 + $0x10] sm:$0xff]   ;;  %v109_v29 = vshrl.u32 %v108_v23, 7 }
   0x3   :  { %v633_v2 = vld [vmem:[%s824_s1 + $0xc0] sm:$0xff]   ;;  %556 = vmatpush3.bf16.msra.mxu0 %v632_v1  ;;  %v637_v6 = vld [vmem:[%s824_s1 + $0xc8] sm:$0xff]   ;;  %v641_v10 = vld [vmem:[%s824_s1 + $0xd0] sm:$0xff]   ;;  %v107_v28 = vunpack.c.0.s8 %v106_v22 }
   0x4   :  { %v634_v3 = vld [vmem:[%s824_s1 + $0x80] sm:$0xff]   ;;  %577 = vmatprep.subr.bf16.mxu1 %v633_v2  ;;  %557 = vmatprep.subr.bf16.mxu0 %v635_v4  ;;  %v638_v7 = vld [vmem:[%s824_s1 + $0x88] sm:$0xff]   ;;  %v642_v11 = vld [vmem:[%s824_s1 + $0x90] sm:$0xff]  }
   0x5   :  { %578 = vmatpush3.bf16.msra.mxu1 %v634_v3  ;;  %v643_v12 = vld [vmem:[%s824_s1 + $0x58] sm:$0xff]   ;;  %v647_v16 = vld [vmem:[%s824_s1 + $0x60] sm:$0xff]   ;;  %v651_v20 = vld [vmem:[%s824_s1 + $0x68] sm:$0xff]   ;;  %v110_v34 = vsub.s32 %v107_v28, %v109_v29 }
   0x6   :  { %579 = vmatprep.subr.bf16.mxu1 %v637_v6  ;;  %v644_v13 = vld [vmem:[%s824_s1 + $0x18] sm:$0xff]   ;;  %v648_v17 = vld [vmem:[%s824_s1 + $0x20] sm:$0xff]   ;;  %v652_v24 = vld [vmem:[%s824_s1 + $0x28] sm:$0xff]  }
   0x7   :  { %558 = vmatpush3.bf16.msra.mxu0 %v636_v5  ;;  %v645_v14 = vld [vmem:[%s824_s1 + $0xd8] sm:$0xff]   ;;  %v649_v18 = vld [vmem:[%s824_s1 + $0xe0] sm:$0xff]   ;;  %v653_v25 = vld [vmem:[%s824_s1 + $0xe8] sm:$0xff]  }
   0x8   :  { %559 = vmatprep.subr.bf16.mxu0 %v639_v8  ;;  %v646_v15 = vld [vmem:[%s824_s1 + $0x98] sm:$0xff]   ;;  %v650_v19 = vld [vmem:[%s824_s1 + $0xa0] sm:$0xff]   ;;  %v654_v26 = vld [vmem:[%s824_s1 + $0xa8] sm:$0xff]  }
   0x9   :  { %580 = vmatpush3.bf16.msra.mxu1 %v638_v7  ;;  %v655_v27 = vld [vmem:[%s824_s1 + $0x70] sm:$0xff]   ;;  %v659_v33 = vld [vmem:[%s824_s1 + $0x78] sm:$0xff]   ;;  %v15_v37 = vld [vmem:[%s825_s0] sm:$0x1f] }
   0xa   :  { %581 = vmatprep.subr.bf16.mxu1 %v641_v10  ;;  %v656_v30 = vld [vmem:[%s824_s1 + $0x30] sm:$0xff]   ;;  %v660_v35 = vld [vmem:[%s824_s1 + $0x38] sm:$0xff]   ;;  %v111_v38 = vrot.slane %v15_v37, %v110_v34  ;;  %v664_v44 = vld [vmem:[%s824_s1 + $0x100] sm:$0xff]   ;;  %v104_v52 = vcombine.high %v15_v37, %v15_v37 }
   0xb   :  { %560 = vmatpush3.bf16.msra.mxu0 %v640_v9  ;;  %v657_v31 = vld [vmem:[%s824_s1 + $0xf0] sm:$0xff]   ;;  %v661_v36 = vld [vmem:[%s824_s1 + $0xf8] sm:$0xff]   ;;  %v665_v47 = vld [vmem:[%s824_s1 + $0x108] sm:$0xff]  }
   0xc   :  { %561 = vmatprep.subr.bf16.mxu0 %v643_v12  ;;  %v658_v32 = vld [vmem:[%s824_s1 + $0xb0] sm:$0xff]   ;;  %v663_v39 = vld [vmem:[%s824_s1 + $0xb8] sm:$0xff]   ;;  %v119_v41 = vcombine.high %v111_v38, %v111_v38  ;;  %v126_v42 = vrot.slane %v111_v38, %v110_v34  ;;  %v668_v50 = vld [vmem:[%s824_s1 + $0x120] sm:$0xff]   ;;  %v118_v54 = vrot.slane %v104_v52, %v110_v34 }
   0xd   :  { %582 = vmatpush3.bf16.msra.mxu1 %v642_v11  ;;  %v666_v48 = vld [vmem:[%s824_s1 + $0x110] sm:$0xff]   ;;  %v667_v49 = vld [vmem:[%s824_s1 + $0x118] sm:$0xff]   ;;  %v669_v51 = vld [vmem:[%s824_s1 + $0x128] sm:$0xff]  }
   0xe   :  { %583 = vmatprep.subr.bf16.mxu1 %v645_v14  ;;  %v140_v43 = vrot.slane %v119_v41, %v110_v34  ;;  %v141_v45 = vcombine.high %v126_v42, %v126_v42  ;;  %v670_v53 = vld [vmem:[%s824_s1 + $0x130] sm:$0xff]   ;;  %v671_v55 = vld [vmem:[%s824_s1 + $0x138] sm:$0xff]   ;;  %v133_v56 = vrot.slane %v118_v54, %v110_v34  ;;  %v514_v58 = vld [vmem:[%s826_s2] ss:$0 sm:$0xff] }
   0xf   :  { %562 = vmatpush3.bf16.msra.mxu0 %v644_v13 }
  0x10   :  { %563 = vmatprep.subr.bf16.mxu0 %v647_v16  ;;  %420 = vmatprep.mubr.bf16.mxu0 %v140_v43  ;;  %v142_v46 = vcombine.high %v140_v43, %v140_v43 }
  0x11   :  { %584 = vmatpush3.bf16.msra.mxu1 %v646_v15 }
  0x12   :  { %585 = vmatprep.subr.bf16.mxu1 %v649_v18  ;;  %460 = vmatprep.mubr.bf16.mxu1 %v142_v46 }
  0x13   :  { %564 = vmatpush3.bf16.msra.mxu0 %v648_v17 }
  0x14   :  { %565 = vmatprep.subr.bf16.mxu0 %v651_v20 }
  0x15   :  { %586 = vmatpush3.bf16.msra.mxu1 %v650_v19 }
  0x16   :  { %587 = vmatprep.subr.bf16.mxu1 %v653_v25 }
  0x17   :  { %566 = vmatpush3.bf16.msra.mxu0 %v652_v24 }
  0x18   :  { %567 = vmatprep.subr.bf16.mxu0 %v655_v27 }
  0x19   :  { %588 = vmatpush3.bf16.msra.mxu1 %v654_v26 }
  0x1a   :  { %589 = vmatprep.subr.bf16.mxu1 %v657_v31 }
  0x1b   :  { %568 = vmatpush3.bf16.msra.mxu0 %v656_v30 }
  0x1c   :  { %569 = vmatprep.subr.bf16.mxu0 %v659_v33 }
  0x1d   :  { %590 = vmatpush3.bf16.msra.mxu1 %v658_v32 }
  0x1e   :  { %591 = vmatprep.subr.bf16.mxu1 %v661_v36 }
  0x1f   :  { %570 = vmatpush3.bf16.msra.mxu0 %v660_v35 }
  0x20   :  { %608 = vmatprep.subr.bf16.mxu0 %v673_v40 }
  0x21   :  { %592 = vmatpush3.bf16.msra.mxu1 %v663_v39 }
  0x22   :  { %421 = vmatmul.mubr.bf16.vlgmr.msra.gmra.mrb[0].mxu0 %v126_v42 }
  0x23   :  { %609 = vmatpush3.bf16.msra.mxu0 %v664_v44  ;;  %624 = vmatprep.mubr.msk.bf16.mxu0 %vm674_vm0, %v673_v40 }
  0x24   :  { %461 = vmatmul.mubr.bf16.vlgmr.msra.gmra.mrb[0].mxu1 %v141_v45  ;;  %610 = vmatprep.subr.bf16.mxu0 %v673_v40 }
  0x27   :  { %611 = vmatpush3.bf16.msra.mxu0 %v665_v47 }
  0x28   :  { %612 = vmatprep.subr.bf16.mxu0 %v673_v40 }
  0x2b   :  { %613 = vmatpush3.bf16.msra.mxu0 %v666_v48 }
  0x2c   :  { %614 = vmatprep.subr.bf16.mxu0 %v673_v40 }
  0x2f   :  { %615 = vmatpush3.bf16.msra.mxu0 %v667_v49 }
  0x30   :  { %616 = vmatprep.subr.bf16.mxu0 %v673_v40 }
  0x33   :  { %617 = vmatpush3.bf16.msra.mxu0 %v668_v50 }
  0x34   :  { %618 = vmatprep.subr.bf16.mxu0 %v673_v40 }
  0x37   :  { %619 = vmatpush3.bf16.msra.mxu0 %v669_v51 }
  0x38   :  { %620 = vmatprep.subr.bf16.mxu0 %v673_v40 }
  0x3b   :  { %621 = vmatpush3.bf16.msra.mxu0 %v670_v53 }
  0x3c   :  { %622 = vmatprep.subr.bf16.mxu0 %v673_v40 }
  0x3f   :  { %623 = vmatpush3.bf16.msra.mxu0 %v671_v55 }
  0x42   :  { %625 = vmatmul.mubr.bf16.vlgmr.msra.gmra.mrb[4].mxu0 %v133_v56 }
  0xf5   :  { %v571_v57 = vpop.f32.mrb[0].mxu0 }
  0xf6   :  { %v572_v59 = vpop.f32.mrb[1].mxu0 }
  0xf7   :  { %v573_v60 = vadd.f32 %v572_v59, %v571_v57  ;;  %v574_v61 = vpop.f32.mrb[2].mxu0  ;;  %v593_v62 = vpop.f32.mrb[0].mxu1 }
  0xf8   :  { %v575_v63 = vpop.f32.mrb[3].mxu0  ;;  %v594_v0 = vpop.f32.mrb[1].mxu1 }
  0xf9   :  { %v423_v1 = vadd.f32 %v573_v60, %v514_v58  ;;  %v595_v2 = vadd.f32 %v594_v0, %v593_v62  ;;  %v596_v3 = vpop.f32.mrb[2].mxu1 }
  0xfa   :  { %v597_v4 = vpop.f32.mrb[3].mxu1 }
  0xfb   :  { %v463_v5 = vadd.f32 %v595_v2, %v423_v1 }
 0x115   :  { %v502_v6 = vpop.f32.mrb[4].mxu0 }
 0x116   :  { %v503_v7 = vadd.f32 %v502_v6, %v463_v5  ;;  %v626_v8 = vpop.f32.mrb[5].mxu0 }
 0x117   :  { %v505_v9 = vpop.f32.mrb[6].mxu0 }
 0x118   :  { %v508_v10 = vpack.c.bf16 %v503_v7, %v503_v7  ;;  %v627_v11 = vpop.f32.mrb[7].mxu0 }
 0x11a   :  { %509 = vst [vmem:[%s827_s3] sm:$0x1] %v508_v10 }

// kernel: lenet5_forward.4
= control target key start
LH: loop header
LB: loop body
LE: loop exit
PB: predicated region body
PF: predicated region fallthrough
CT: control target
= control target key end

     0   :  { %s2628_s1 = inlined_call_operand.vmem [shape: bf16[768,512], index: 1, kind: input, shape index: {}]   ;;  %s2629_s0 = inlined_call_operand.vmem [shape: bf16[10,768], index: 0, kind: input, shape index: {}]   ;;  %s2630_s2 = inlined_call_operand.vmem [shape: f32[1,128], index: 2, kind: input, shape index: {}]   ;;  %s2631_s3 = inlined_call_operand.vmem [shape: bf16[10,128], index: 3, kind: output, shape index: {}]  }
   0x1   :  { %v1708_v0 = vld [vmem:[%s2628_s1 + $0x4] ss:$16 sps:$4 sm:$0xff]   ;;  %v1710_v1 = vld [vmem:[%s2628_s1 + $0xc] ss:$16 sps:$4 sm:$0xff]   ;;  %v1712_v2 = vld [vmem:[%s2628_s1] ss:$16 sps:$4 sm:$0xff]  }
   0x2   :  { %1202 = vmatprep.subr.bf16.mxu0 %v1708_v0  ;;  %v1713_v3 = vld [vmem:[%s2628_s1 + $0x8] ss:$16 sps:$4 sm:$0xff]   ;;  %1331 = vmatprep.subr.bf16.mxu1 %v1710_v1  ;;  %v1714_v4 = vld [vmem:[%s2628_s1 + $0x24] ss:$16 sps:$4 sm:$0xff]   ;;  %v1716_v5 = vld [vmem:[%s2628_s1 + $0x2c] ss:$16 sps:$4 sm:$0xff]  }
   0x3   :  { %1203 = vmatpush1.bf16.msra.mxu0 %v1712_v2  ;;  %1332 = vmatpush1.bf16.msra.mxu1 %v1713_v3  ;;  %v1718_v6 = vld [vmem:[%s2628_s1 + $0x20] ss:$16 sps:$4 sm:$0xff]   ;;  %v1719_v7 = vld [vmem:[%s2628_s1 + $0x28] ss:$16 sps:$4 sm:$0xff]   ;;  %v1720_v8 = vld [vmem:[%s2628_s1 + $0x44] ss:$16 sps:$4 sm:$0xff]  }
   0x4   :  { %1204 = vmatprep.subr.bf16.mxu0 %v1714_v4  ;;  %1333 = vmatprep.subr.bf16.mxu1 %v1716_v5  ;;  %v1722_v9 = vld [vmem:[%s2628_s1 + $0x4c] ss:$16 sps:$4 sm:$0xff]   ;;  %v1724_v10 = vld [vmem:[%s2628_s1 + $0x40] ss:$16 sps:$4 sm:$0xff]   ;;  %v1725_v11 = vld [vmem:[%s2628_s1 + $0x48] ss:$16 sps:$4 sm:$0xff]  }
   0x5   :  { %v1726_v12 = vld [vmem:[%s2628_s1 + $0x64] ss:$16 sps:$4 sm:$0xff]   ;;  %v1728_v13 = vld [vmem:[%s2628_s1 + $0x6c] ss:$16 sps:$4 sm:$0xff]   ;;  %v1730_v14 = vld [vmem:[%s2628_s1 + $0x60] ss:$16 sps:$4 sm:$0xff]  }
   0x6   :  { %v1731_v15 = vld [vmem:[%s2628_s1 + $0x68] ss:$16 sps:$4 sm:$0xff]   ;;  %v1732_v16 = vld [vmem:[%s2628_s1 + $0x84] ss:$16 sps:$4 sm:$0xff]   ;;  %v1734_v17 = vld [vmem:[%s2628_s1 + $0x8c] ss:$16 sps:$4 sm:$0xff]  }
   0x7   :  { %1205 = vmatpush1.bf16.msra.mxu0 %v1718_v6  ;;  %1334 = vmatpush1.bf16.msra.mxu1 %v1719_v7  ;;  %v1736_v18 = vld [vmem:[%s2628_s1 + $0x80] ss:$16 sps:$4 sm:$0xff]   ;;  %v1737_v19 = vld [vmem:[%s2628_s1 + $0x88] ss:$16 sps:$4 sm:$0xff]   ;;  %v1738_v20 = vld [vmem:[%s2628_s1 + $0xa4] ss:$16 sps:$4 sm:$0xff]  }
   0x8   :  { %1206 = vmatprep.subr.bf16.mxu0 %v1720_v8  ;;  %1335 = vmatprep.subr.bf16.mxu1 %v1722_v9  ;;  %v1740_v21 = vld [vmem:[%s2628_s1 + $0xac] ss:$16 sps:$4 sm:$0xff]   ;;  %v1742_v22 = vld [vmem:[%s2628_s1 + $0xa0] ss:$16 sps:$4 sm:$0xff]   ;;  %v1743_v23 = vld [vmem:[%s2628_s1 + $0xa8] ss:$16 sps:$4 sm:$0xff]  }
   0x9   :  { %v1744_v24 = vld [vmem:[%s2628_s1 + $0xc4] ss:$16 sps:$4 sm:$0xff]   ;;  %v1746_v25 = vld [vmem:[%s2628_s1 + $0xcc] ss:$16 sps:$4 sm:$0xff]   ;;  %v1748_v26 = vld [vmem:[%s2628_s1 + $0xc0] ss:$16 sps:$4 sm:$0xff]  }
   0xa   :  { %v1749_v27 = vld [vmem:[%s2628_s1 + $0xc8] ss:$16 sps:$4 sm:$0xff]   ;;  %v1750_v28 = vld [vmem:[%s2628_s1 + $0xe4] ss:$16 sps:$4 sm:$0xff]   ;;  %v1752_v29 = vld [vmem:[%s2628_s1 + $0xec] ss:$16 sps:$4 sm:$0xff]  }
   0xb   :  { %1207 = vmatpush1.bf16.msra.mxu0 %v1724_v10  ;;  %1336 = vmatpush1.bf16.msra.mxu1 %v1725_v11  ;;  %v1754_v30 = vld [vmem:[%s2628_s1 + $0xe0] ss:$16 sps:$4 sm:$0xff]   ;;  %v1755_v31 = vld [vmem:[%s2628_s1 + $0xe8] ss:$16 sps:$4 sm:$0xff]   ;;  %v1756_v32 = vld [vmem:[%s2628_s1 + $0x104] ss:$16 sps:$4 sm:$0xff]  }
   0xc   :  { %1208 = vmatprep.subr.bf16.mxu0 %v1726_v12  ;;  %1337 = vmatprep.subr.bf16.mxu1 %v1728_v13  ;;  %v1758_v33 = vld [vmem:[%s2628_s1 + $0x10c] ss:$16 sps:$4 sm:$0xff]   ;;  %v1760_v34 = vld [vmem:[%s2628_s1 + $0x100] ss:$16 sps:$4 sm:$0xff]   ;;  %v1761_v35 = vld [vmem:[%s2628_s1 + $0x108] ss:$16 sps:$4 sm:$0xff]  }
   0xd   :  { %v1762_v36 = vld [vmem:[%s2628_s1 + $0x124] ss:$16 sps:$4 sm:$0xff]   ;;  %v1764_v37 = vld [vmem:[%s2628_s1 + $0x12c] ss:$16 sps:$4 sm:$0xff]   ;;  %v1766_v38 = vld [vmem:[%s2628_s1 + $0x120] ss:$16 sps:$4 sm:$0xff]  }
   0xe   :  { %v1767_v39 = vld [vmem:[%s2628_s1 + $0x128] ss:$16 sps:$4 sm:$0xff]   ;;  %v1768_v40 = vld [vmem:[%s2628_s1 + $0x144] ss:$16 sps:$4 sm:$0xff]   ;;  %v1770_v41 = vld [vmem:[%s2628_s1 + $0x14c] ss:$16 sps:$4 sm:$0xff]  }
   0xf   :  { %1209 = vmatpush1.bf16.msra.mxu0 %v1730_v14  ;;  %1338 = vmatpush1.bf16.msra.mxu1 %v1731_v15  ;;  %v1772_v42 = vld [vmem:[%s2628_s1 + $0x140] ss:$16 sps:$4 sm:$0xff]   ;;  %v1773_v43 = vld [vmem:[%s2628_s1 + $0x148] ss:$16 sps:$4 sm:$0xff]   ;;  %v1774_v44 = vld [vmem:[%s2628_s1 + $0x164] ss:$16 sps:$4 sm:$0xff]  }
  0x10   :  { %1210 = vmatprep.subr.bf16.mxu0 %v1732_v16  ;;  %1339 = vmatprep.subr.bf16.mxu1 %v1734_v17  ;;  %v1776_v45 = vld [vmem:[%s2628_s1 + $0x16c] ss:$16 sps:$4 sm:$0xff]   ;;  %v1778_v46 = vld [vmem:[%s2628_s1 + $0x160] ss:$16 sps:$4 sm:$0xff]   ;;  %v1779_v47 = vld [vmem:[%s2628_s1 + $0x168] ss:$16 sps:$4 sm:$0xff]  }
  0x11   :  { %v1780_v48 = vld [vmem:[%s2628_s1 + $0x184] ss:$16 sps:$4 sm:$0xff]   ;;  %v1782_v50 = vld [vmem:[%s2628_s1 + $0x18c] ss:$16 sps:$4 sm:$0xff]   ;;  %v1784_v51 = vld [vmem:[%s2628_s1 + $0x180] ss:$16 sps:$4 sm:$0xff]  }
  0x12   :  { %v1806_v49 = vld [vmem:[%s2629_s0 + $0x4] ss:$24 sps:$4 sm:$0x1f]   ;;  %v1785_v52 = vld [vmem:[%s2628_s1 + $0x188] ss:$16 sps:$4 sm:$0xff]  }
  0x13   :  { %1211 = vmatpush1.bf16.msra.mxu0 %v1736_v18  ;;  %1340 = vmatpush1.bf16.msra.mxu1 %v1737_v19  ;;  %v1786_v53 = vld [vmem:[%s2628_s1 + $0x1a4] ss:$16 sps:$4 sm:$0xff]   ;;  %v1788_v54 = vld [vmem:[%s2628_s1 + $0x1ac] ss:$16 sps:$4 sm:$0xff]   ;;  %v1790_v55 = vld [vmem:[%s2628_s1 + $0x1a0] ss:$16 sps:$4 sm:$0xff]  }
  0x14   :  { %1212 = vmatprep.subr.bf16.mxu0 %v1738_v20  ;;  %1341 = vmatprep.subr.bf16.mxu1 %v1740_v21  ;;  %v1791_v56 = vld [vmem:[%s2628_s1 + $0x1a8] ss:$16 sps:$4 sm:$0xff]   ;;  %v1792_v57 = vld [vmem:[%s2628_s1 + $0x1c4] ss:$16 sps:$4 sm:$0xff]   ;;  %v1794_v58 = vld [vmem:[%s2628_s1 + $0x1cc] ss:$16 sps:$4 sm:$0xff]  }
  0x15   :  { %1234 = vmatprep.mubr.bf16.mxu0 %v1806_v49  ;;  %1363 = vmatprep.mubr.bf16.mxu1 %v1806_v49  ;;  %v1796_v59 = vld [vmem:[%s2628_s1 + $0x1c0] ss:$16 sps:$4 sm:$0xff]   ;;  %v1797_v60 = vld [vmem:[%s2628_s1 + $0x1c8] ss:$16 sps:$4 sm:$0xff]   ;;  %v1798_v61 = vld [vmem:[%s2628_s1 + $0x1e4] ss:$16 sps:$4 sm:$0xff]  }
  0x16   :  { %v1800_v62 = vld [vmem:[%s2628_s1 + $0x1ec] ss:$16 sps:$4 sm:$0xff]   ;;  %v1802_v63 = vld [vmem:[%s2628_s1 + $0x1e0] ss:$16 sps:$4 sm:$0xff]   ;;  %v1803_v0 = vld [vmem:[%s2628_s1 + $0x1e8] ss:$16 sps:$4 sm:$0xff]  }
  0x17   :  { %1213 = vmatpush1.bf16.msra.mxu0 %v1742_v22  ;;  %1342 = vmatpush1.bf16.msra.mxu1 %v1743_v23  ;;  %v1809_v1 = vld [vmem:[%s2628_s1 + $0x204] ss:$16 sps:$4 sm:$0xff]   ;;  %v1812_v2 = vld [vmem:[%s2628_s1 + $0x20c] ss:$16 sps:$4 sm:$0xff]   ;;  %v1807_v4 = vld [vmem:[%s2628_s1 + $0x200] ss:$16 sps:$4 sm:$0xff]  }
  0x18   :  { %1214 = vmatprep.subr.bf16.mxu0 %v1744_v24  ;;  %1343 = vmatprep.subr.bf16.mxu1 %v1746_v25  ;;  %v1804_v3 = vld [vmem:[%s2629_s0] ss:$24 sps:$4 sm:$0x1f]   ;;  %v1815_v6 = vld [vmem:[%s2628_s1 + $0x224] ss:$16 sps:$4 sm:$0xff]  }
  0x19   :  { %v1810_v5 = vld [vmem:[%s2628_s1 + $0x208] ss:$16 sps:$4 sm:$0xff]   ;;  %v1818_v7 = vld [vmem:[%s2628_s1 + $0x22c] ss:$16 sps:$4 sm:$0xff]   ;;  %v1813_v8 = vld [vmem:[%s2628_s1 + $0x220] ss:$16 sps:$4 sm:$0xff]  }
  0x1a   :  { %v1816_v9 = vld [vmem:[%s2628_s1 + $0x228] ss:$16 sps:$4 sm:$0xff]   ;;  %v1821_v10 = vld [vmem:[%s2628_s1 + $0x244] ss:$16 sps:$4 sm:$0xff]   ;;  %v1824_v11 = vld [vmem:[%s2628_s1 + $0x24c] ss:$16 sps:$4 sm:$0xff]  }
  0x1b   :  { %1215 = vmatpush1.bf16.msra.mxu0 %v1748_v26  ;;  %1344 = vmatpush1.bf16.msra.mxu1 %v1749_v27  ;;  %v1819_v12 = vld [vmem:[%s2628_s1 + $0x240] ss:$16 sps:$4 sm:$0xff]   ;;  %v1822_v13 = vld [vmem:[%s2628_s1 + $0x248] ss:$16 sps:$4 sm:$0xff]   ;;  %v1827_v14 = vld [vmem:[%s2628_s1 + $0x264] ss:$16 sps:$4 sm:$0xff]  }
  0x1c   :  { %1216 = vmatprep.subr.bf16.mxu0 %v1750_v28  ;;  %1345 = vmatprep.subr.bf16.mxu1 %v1752_v29  ;;  %v1830_v15 = vld [vmem:[%s2628_s1 + $0x26c] ss:$16 sps:$4 sm:$0xff]   ;;  %v1825_v16 = vld [vmem:[%s2628_s1 + $0x260] ss:$16 sps:$4 sm:$0xff]   ;;  %v1828_v17 = vld [vmem:[%s2628_s1 + $0x268] ss:$16 sps:$4 sm:$0xff]  }
  0x1d   :  { %v1833_v18 = vld [vmem:[%s2628_s1 + $0x284] ss:$16 sps:$4 sm:$0xff]   ;;  %v1836_v19 = vld [vmem:[%s2628_s1 + $0x28c] ss:$16 sps:$4 sm:$0xff]   ;;  %v1831_v20 = vld [vmem:[%s2628_s1 + $0x280] ss:$16 sps:$4 sm:$0xff]  }
  0x1e   :  { %v1834_v21 = vld [vmem:[%s2628_s1 + $0x288] ss:$16 sps:$4 sm:$0xff]   ;;  %v1839_v22 = vld [vmem:[%s2628_s1 + $0x2a4] ss:$16 sps:$4 sm:$0xff]   ;;  %v1842_v23 = vld [vmem:[%s2628_s1 + $0x2ac] ss:$16 sps:$4 sm:$0xff]  }
  0x1f   :  { %1217 = vmatpush1.bf16.msra.mxu0 %v1754_v30  ;;  %1346 = vmatpush1.bf16.msra.mxu1 %v1755_v31  ;;  %v1837_v24 = vld [vmem:[%s2628_s1 + $0x2a0] ss:$16 sps:$4 sm:$0xff]   ;;  %v1840_v25 = vld [vmem:[%s2628_s1 + $0x2a8] ss:$16 sps:$4 sm:$0xff]   ;;  %v1845_v26 = vld [vmem:[%s2628_s1 + $0x2c4] ss:$16 sps:$4 sm:$0xff]  }
  0x20   :  { %1218 = vmatprep.subr.bf16.mxu0 %v1756_v32  ;;  %1347 = vmatprep.subr.bf16.mxu1 %v1758_v33  ;;  %v1848_v27 = vld [vmem:[%s2628_s1 + $0x2cc] ss:$16 sps:$4 sm:$0xff]   ;;  %v1843_v28 = vld [vmem:[%s2628_s1 + $0x2c0] ss:$16 sps:$4 sm:$0xff]   ;;  %v1846_v29 = vld [vmem:[%s2628_s1 + $0x2c8] ss:$16 sps:$4 sm:$0xff]  }
  0x21   :  { %v1851_v30 = vld [vmem:[%s2628_s1 + $0x2e4] ss:$16 sps:$4 sm:$0xff]   ;;  %v1854_v32 = vld [vmem:[%s2628_s1 + $0x2ec] ss:$16 sps:$4 sm:$0xff]   ;;  %v1849_v33 = vld [vmem:[%s2628_s1 + $0x2e0] ss:$16 sps:$4 sm:$0xff]  }
  0x22   :  { %v1905_v31 = vld [vmem:[%s2629_s0 + $0xc] ss:$24 sps:$4 sm:$0x1f]   ;;  %v1873_v49 = vld [vmem:[%s2628_s1 + $0x360] ss:$16 sps:$4 sm:$0xff]  }
  0x23   :  { %1219 = vmatpush1.bf16.msra.mxu0 %v1760_v34  ;;  %1348 = vmatpush1.bf16.msra.mxu1 %v1761_v35  ;;  %v1852_v34 = vld [vmem:[%s2628_s1 + $0x2e8] ss:$16 sps:$4 sm:$0xff]   ;;  %v1857_v35 = vld [vmem:[%s2628_s1 + $0x304] ss:$16 sps:$4 sm:$0xff]  }
  0x24   :  { %1220 = vmatprep.subr.bf16.mxu0 %v1762_v36  ;;  %1349 = vmatprep.subr.bf16.mxu1 %v1764_v37  ;;  %v1860_v36 = vld [vmem:[%s2628_s1 + $0x30c] ss:$16 sps:$4 sm:$0xff]   ;;  %v1855_v37 = vld [vmem:[%s2628_s1 + $0x300] ss:$16 sps:$4 sm:$0xff]  }
  0x27   :  { %1221 = vmatpush1.bf16.msra.mxu0 %v1766_v38  ;;  %1350 = vmatpush1.bf16.msra.mxu1 %v1767_v39  ;;  %v1858_v38 = vld [vmem:[%s2628_s1 + $0x308] ss:$16 sps:$4 sm:$0xff]   ;;  %v1863_v39 = vld [vmem:[%s2628_s1 + $0x324] ss:$16 sps:$4 sm:$0xff]  }
  0x28   :  { %1222 = vmatprep.subr.bf16.mxu0 %v1768_v40  ;;  %1351 = vmatprep.subr.bf16.mxu1 %v1770_v41  ;;  %v1866_v40 = vld [vmem:[%s2628_s1 + $0x32c] ss:$16 sps:$4 sm:$0xff]   ;;  %v1861_v41 = vld [vmem:[%s2628_s1 + $0x320] ss:$16 sps:$4 sm:$0xff]  }
  0x2b   :  { %1223 = vmatpush1.bf16.msra.mxu0 %v1772_v42  ;;  %1352 = vmatpush1.bf16.msra.mxu1 %v1773_v43  ;;  %v1864_v42 = vld [vmem:[%s2628_s1 + $0x328] ss:$16 sps:$4 sm:$0xff]   ;;  %v1869_v43 = vld [vmem:[%s2628_s1 + $0x344] ss:$16 sps:$4 sm:$0xff]  }
  0x2c   :  { %1224 = vmatprep.subr.bf16.mxu0 %v1774_v44  ;;  %1353 = vmatprep.subr.bf16.mxu1 %v1776_v45  ;;  %v1872_v44 = vld [vmem:[%s2628_s1 + $0x34c] ss:$16 sps:$4 sm:$0xff]   ;;  %v1867_v45 = vld [vmem:[%s2628_s1 + $0x340] ss:$16 sps:$4 sm:$0xff]  }
  0x2f   :  { %1225 = vmatpush1.bf16.msra.mxu0 %v1778_v46  ;;  %1354 = vmatpush1.bf16.msra.mxu1 %v1779_v47  ;;  %v1870_v46 = vld [vmem:[%s2628_s1 + $0x348] ss:$16 sps:$4 sm:$0xff]   ;;  %v1875_v47 = vld [vmem:[%s2628_s1 + $0x364] ss:$16 sps:$4 sm:$0xff]  }
  0x30   :  { %1226 = vmatprep.subr.bf16.mxu0 %v1780_v48  ;;  %1355 = vmatprep.subr.bf16.mxu1 %v1782_v50  ;;  %v1878_v48 = vld [vmem:[%s2628_s1 + $0x36c] ss:$16 sps:$4 sm:$0xff]   ;;  %v1876_v50 = vld [vmem:[%s2628_s1 + $0x368] ss:$16 sps:$4 sm:$0xff]  }
  0x33   :  { %1227 = vmatpush1.bf16.msra.mxu0 %v1784_v51  ;;  %1356 = vmatpush1.bf16.msra.mxu1 %v1785_v52  ;;  %v1881_v51 = vld [vmem:[%s2628_s1 + $0x384] ss:$16 sps:$4 sm:$0xff]   ;;  %v1884_v52 = vld [vmem:[%s2628_s1 + $0x38c] ss:$16 sps:$4 sm:$0xff]  }
  0x34   :  { %1228 = vmatprep.subr.bf16.mxu0 %v1786_v53  ;;  %1357 = vmatprep.subr.bf16.mxu1 %v1788_v54  ;;  %v1879_v53 = vld [vmem:[%s2628_s1 + $0x380] ss:$16 sps:$4 sm:$0xff]   ;;  %v1882_v54 = vld [vmem:[%s2628_s1 + $0x388] ss:$16 sps:$4 sm:$0xff]  }
  0x37   :  { %1229 = vmatpush1.bf16.msra.mxu0 %v1790_v55  ;;  %1358 = vmatpush1.bf16.msra.mxu1 %v1791_v56  ;;  %v1887_v55 = vld [vmem:[%s2628_s1 + $0x3a4] ss:$16 sps:$4 sm:$0xff]   ;;  %v1890_v56 = vld [vmem:[%s2628_s1 + $0x3ac] ss:$16 sps:$4 sm:$0xff]  }
  0x38   :  { %1230 = vmatprep.subr.bf16.mxu0 %v1792_v57  ;;  %1359 = vmatprep.subr.bf16.mxu1 %v1794_v58  ;;  %v1885_v57 = vld [vmem:[%s2628_s1 + $0x3a0] ss:$16 sps:$4 sm:$0xff]   ;;  %v1888_v58 = vld [vmem:[%s2628_s1 + $0x3a8] ss:$16 sps:$4 sm:$0xff]  }
  0x3b   :  { %1231 = vmatpush1.bf16.msra.mxu0 %v1796_v59  ;;  %1360 = vmatpush1.bf16.msra.mxu1 %v1797_v60  ;;  %v1893_v59 = vld [vmem:[%s2628_s1 + $0x3c4] ss:$16 sps:$4 sm:$0xff]   ;;  %v1896_v60 = vld [vmem:[%s2628_s1 + $0x3cc] ss:$16 sps:$4 sm:$0xff]  }
  0x3c   :  { %1232 = vmatprep.subr.bf16.mxu0 %v1798_v61  ;;  %1361 = vmatprep.subr.bf16.mxu1 %v1800_v62  ;;  %v1891_v61 = vld [vmem:[%s2628_s1 + $0x3c0] ss:$16 sps:$4 sm:$0xff]   ;;  %v1894_v62 = vld [vmem:[%s2628_s1 + $0x3c8] ss:$16 sps:$4 sm:$0xff]  }
  0x3f   :  { %1233 = vmatpush1.bf16.msra.mxu0 %v1802_v63  ;;  %1362 = vmatpush1.bf16.msra.mxu1 %v1803_v0  ;;  %v1899_v63 = vld [vmem:[%s2628_s1 + $0x3e4] ss:$16 sps:$4 sm:$0xff]   ;;  %v1902_v0 = vld [vmem:[%s2628_s1 + $0x3ec] ss:$16 sps:$4 sm:$0xff]  }
  0x40   :  { %1245 = vmatprep.subr.bf16.mxu0 %v1809_v1  ;;  %1374 = vmatprep.subr.bf16.mxu1 %v1812_v2  ;;  %v1897_v1 = vld [vmem:[%s2628_s1 + $0x3e0] ss:$16 sps:$4 sm:$0xff]   ;;  %v1900_v2 = vld [vmem:[%s2628_s1 + $0x3e8] ss:$16 sps:$4 sm:$0xff]  }
  0x42   :  { %1235 = vmatmul.mubr.bf16.vlgmr.msra.gmra.mrb[0].mxu0 %v1804_v3  ;;  %1364 = vmatmul.mubr.bf16.vlgmr.msra.gmra.mrb[0].mxu1 %v1804_v3  ;;  %v1908_v3 = vld [vmem:[%s2628_s1 + $0x404] ss:$16 sps:$4 sm:$0xff]  }
  0x43   :  { %1246 = vmatpush1.bf16.msra.mxu0 %v1807_v4  ;;  %1375 = vmatpush1.bf16.msra.mxu1 %v1810_v5  ;;  %v1911_v4 = vld [vmem:[%s2628_s1 + $0x40c] ss:$16 sps:$4 sm:$0xff]   ;;  %v1903_v5 = vld [vmem:[%s2629_s0 + $0x8] ss:$24 sps:$4 sm:$0x1f]  }
  0x44   :  { %1247 = vmatprep.subr.bf16.mxu0 %v1815_v6  ;;  %1376 = vmatprep.subr.bf16.mxu1 %v1818_v7  ;;  %v1906_v6 = vld [vmem:[%s2628_s1 + $0x400] ss:$16 sps:$4 sm:$0xff]   ;;  %v1909_v7 = vld [vmem:[%s2628_s1 + $0x408] ss:$16 sps:$4 sm:$0xff]  }
  0x45   :  { %1277 = vmatprep.mubr.bf16.mxu0 %v1905_v31  ;;  %1406 = vmatprep.mubr.bf16.mxu1 %v1905_v31  ;;  %v1942_v31 = vld [vmem:[%s2628_s1 + $0x4c0] ss:$16 sps:$4 sm:$0xff]  }
  0x47   :  { %1248 = vmatpush1.bf16.msra.mxu0 %v1813_v8  ;;  %1377 = vmatpush1.bf16.msra.mxu1 %v1816_v9  ;;  %v1914_v8 = vld [vmem:[%s2628_s1 + $0x424] ss:$16 sps:$4 sm:$0xff]   ;;  %v1917_v9 = vld [vmem:[%s2628_s1 + $0x42c] ss:$16 sps:$4 sm:$0xff]  }
  0x48   :  { %1249 = vmatprep.subr.bf16.mxu0 %v1821_v10  ;;  %1378 = vmatprep.subr.bf16.mxu1 %v1824_v11  ;;  %v1912_v10 = vld [vmem:[%s2628_s1 + $0x420] ss:$16 sps:$4 sm:$0xff]   ;;  %v1915_v11 = vld [vmem:[%s2628_s1 + $0x428] ss:$16 sps:$4 sm:$0xff]  }
  0x4b   :  { %1250 = vmatpush1.bf16.msra.mxu0 %v1819_v12  ;;  %1379 = vmatpush1.bf16.msra.mxu1 %v1822_v13  ;;  %v2004_v12 = vld [vmem:[%s2629_s0 + $0x14] ss:$24 sps:$4 sm:$0x1f]  }
  0x4c   :  { %1251 = vmatprep.subr.bf16.mxu0 %v1827_v14  ;;  %1380 = vmatprep.subr.bf16.mxu1 %v1830_v15  ;;  %v1920_v13 = vld [vmem:[%s2628_s1 + $0x444] ss:$16 sps:$4 sm:$0xff]   ;;  %v1923_v14 = vld [vmem:[%s2628_s1 + $0x44c] ss:$16 sps:$4 sm:$0xff]   ;;  %v1918_v15 = vld [vmem:[%s2628_s1 + $0x440] ss:$16 sps:$4 sm:$0xff]  }
  0x4f   :  { %1252 = vmatpush1.bf16.msra.mxu0 %v1825_v16  ;;  %1381 = vmatpush1.bf16.msra.mxu1 %v1828_v17  ;;  %v1921_v16 = vld [vmem:[%s2628_s1 + $0x448] ss:$16 sps:$4 sm:$0xff]   ;;  %v1926_v17 = vld [vmem:[%s2628_s1 + $0x464] ss:$16 sps:$4 sm:$0xff]  }
  0x50   :  { %1253 = vmatprep.subr.bf16.mxu0 %v1833_v18  ;;  %1382 = vmatprep.subr.bf16.mxu1 %v1836_v19  ;;  %v1929_v18 = vld [vmem:[%s2628_s1 + $0x46c] ss:$16 sps:$4 sm:$0xff]   ;;  %v1924_v19 = vld [vmem:[%s2628_s1 + $0x460] ss:$16 sps:$4 sm:$0xff]  }
  0x53   :  { %1254 = vmatpush1.bf16.msra.mxu0 %v1831_v20  ;;  %1383 = vmatpush1.bf16.msra.mxu1 %v1834_v21  ;;  %v1927_v20 = vld [vmem:[%s2628_s1 + $0x468] ss:$16 sps:$4 sm:$0xff]   ;;  %v1932_v21 = vld [vmem:[%s2628_s1 + $0x484] ss:$16 sps:$4 sm:$0xff]  }
  0x54   :  { %1255 = vmatprep.subr.bf16.mxu0 %v1839_v22  ;;  %1384 = vmatprep.subr.bf16.mxu1 %v1842_v23  ;;  %v1935_v22 = vld [vmem:[%s2628_s1 + $0x48c] ss:$16 sps:$4 sm:$0xff]   ;;  %v1930_v23 = vld [vmem:[%s2628_s1 + $0x480] ss:$16 sps:$4 sm:$0xff]  }
  0x57   :  { %1256 = vmatpush1.bf16.msra.mxu0 %v1837_v24  ;;  %1385 = vmatpush1.bf16.msra.mxu1 %v1840_v25  ;;  %v1933_v24 = vld [vmem:[%s2628_s1 + $0x488] ss:$16 sps:$4 sm:$0xff]   ;;  %v1938_v25 = vld [vmem:[%s2628_s1 + $0x4a4] ss:$16 sps:$4 sm:$0xff]  }
  0x58   :  { %1257 = vmatprep.subr.bf16.mxu0 %v1845_v26  ;;  %1386 = vmatprep.subr.bf16.mxu1 %v1848_v27  ;;  %v1941_v26 = vld [vmem:[%s2628_s1 + $0x4ac] ss:$16 sps:$4 sm:$0xff]   ;;  %v1936_v27 = vld [vmem:[%s2628_s1 + $0x4a0] ss:$16 sps:$4 sm:$0xff]  }
  0x5b   :  { %1258 = vmatpush1.bf16.msra.mxu0 %v1843_v28  ;;  %1387 = vmatpush1.bf16.msra.mxu1 %v1846_v29  ;;  %v1939_v28 = vld [vmem:[%s2628_s1 + $0x4a8] ss:$16 sps:$4 sm:$0xff]   ;;  %v1944_v29 = vld [vmem:[%s2628_s1 + $0x4c4] ss:$16 sps:$4 sm:$0xff]  }
  0x5c   :  { %1259 = vmatprep.subr.bf16.mxu0 %v1851_v30  ;;  %1388 = vmatprep.subr.bf16.mxu1 %v1854_v32  ;;  %v1947_v30 = vld [vmem:[%s2628_s1 + $0x4cc] ss:$16 sps:$4 sm:$0xff]   ;;  %v1945_v32 = vld [vmem:[%s2628_s1 + $0x4c8] ss:$16 sps:$4 sm:$0xff]  }
  0x5f   :  { %1260 = vmatpush1.bf16.msra.mxu0 %v1849_v33  ;;  %1389 = vmatpush1.bf16.msra.mxu1 %v1852_v34  ;;  %v1950_v33 = vld [vmem:[%s2628_s1 + $0x4e4] ss:$16 sps:$4 sm:$0xff]   ;;  %v1953_v34 = vld [vmem:[%s2628_s1 + $0x4ec] ss:$16 sps:$4 sm:$0xff]  }
  0x60   :  { %1261 = vmatprep.subr.bf16.mxu0 %v1857_v35  ;;  %1390 = vmatprep.subr.bf16.mxu1 %v1860_v36  ;;  %v1948_v35 = vld [vmem:[%s2628_s1 + $0x4e0] ss:$16 sps:$4 sm:$0xff]   ;;  %v1951_v36 = vld [vmem:[%s2628_s1 + $0x4e8] ss:$16 sps:$4 sm:$0xff]  }
  0x63   :  { %1262 = vmatpush1.bf16.msra.mxu0 %v1855_v37  ;;  %1391 = vmatpush1.bf16.msra.mxu1 %v1858_v38  ;;  %v1956_v37 = vld [vmem:[%s2628_s1 + $0x504] ss:$16 sps:$4 sm:$0xff]   ;;  %v1959_v38 = vld [vmem:[%s2628_s1 + $0x50c] ss:$16 sps:$4 sm:$0xff]  }
  0x64   :  { %1263 = vmatprep.subr.bf16.mxu0 %v1863_v39  ;;  %1392 = vmatprep.subr.bf16.mxu1 %v1866_v40  ;;  %v1954_v39 = vld [vmem:[%s2628_s1 + $0x500] ss:$16 sps:$4 sm:$0xff]   ;;  %v1957_v40 = vld [vmem:[%s2628_s1 + $0x508] ss:$16 sps:$4 sm:$0xff]  }
  0x67   :  { %1264 = vmatpush1.bf16.msra.mxu0 %v1861_v41  ;;  %1393 = vmatpush1.bf16.msra.mxu1 %v1864_v42  ;;  %v1962_v41 = vld [vmem:[%s2628_s1 + $0x524] ss:$16 sps:$4 sm:$0xff]   ;;  %v1965_v42 = vld [vmem:[%s2628_s1 + $0x52c] ss:$16 sps:$4 sm:$0xff]  }
  0x68   :  { %1265 = vmatprep.subr.bf16.mxu0 %v1869_v43  ;;  %1394 = vmatprep.subr.bf16.mxu1 %v1872_v44  ;;  %v1960_v43 = vld [vmem:[%s2628_s1 + $0x520] ss:$16 sps:$4 sm:$0xff]   ;;  %v1963_v44 = vld [vmem:[%s2628_s1 + $0x528] ss:$16 sps:$4 sm:$0xff]  }
  0x6b   :  { %1266 = vmatpush1.bf16.msra.mxu0 %v1867_v45  ;;  %1395 = vmatpush1.bf16.msra.mxu1 %v1870_v46  ;;  %v1968_v45 = vld [vmem:[%s2628_s1 + $0x544] ss:$16 sps:$4 sm:$0xff]   ;;  %v1971_v46 = vld [vmem:[%s2628_s1 + $0x54c] ss:$16 sps:$4 sm:$0xff]  }
  0x6c   :  { %1267 = vmatprep.subr.bf16.mxu0 %v1875_v47  ;;  %1396 = vmatprep.subr.bf16.mxu1 %v1878_v48  ;;  %v1966_v47 = vld [vmem:[%s2628_s1 + $0x540] ss:$16 sps:$4 sm:$0xff]   ;;  %v1969_v48 = vld [vmem:[%s2628_s1 + $0x548] ss:$16 sps:$4 sm:$0xff]  }
  0x6f   :  { %1268 = vmatpush1.bf16.msra.mxu0 %v1873_v49  ;;  %1397 = vmatpush1.bf16.msra.mxu1 %v1876_v50  ;;  %v1974_v49 = vld [vmem:[%s2628_s1 + $0x564] ss:$16 sps:$4 sm:$0xff]   ;;  %v1977_v50 = vld [vmem:[%s2628_s1 + $0x56c] ss:$16 sps:$4 sm:$0xff]  }
  0x70   :  { %1269 = vmatprep.subr.bf16.mxu0 %v1881_v51  ;;  %1398 = vmatprep.subr.bf16.mxu1 %v1884_v52  ;;  %v1972_v51 = vld [vmem:[%s2628_s1 + $0x560] ss:$16 sps:$4 sm:$0xff]   ;;  %v1975_v52 = vld [vmem:[%s2628_s1 + $0x568] ss:$16 sps:$4 sm:$0xff]  }
  0x73   :  { %1270 = vmatpush1.bf16.msra.mxu0 %v1879_v53  ;;  %1399 = vmatpush1.bf16.msra.mxu1 %v1882_v54  ;;  %v1980_v53 = vld [vmem:[%s2628_s1 + $0x584] ss:$16 sps:$4 sm:$0xff]   ;;  %v1983_v54 = vld [vmem:[%s2628_s1 + $0x58c] ss:$16 sps:$4 sm:$0xff]  }
  0x74   :  { %1271 = vmatprep.subr.bf16.mxu0 %v1887_v55  ;;  %1400 = vmatprep.subr.bf16.mxu1 %v1890_v56  ;;  %v1978_v55 = vld [vmem:[%s2628_s1 + $0x580] ss:$16 sps:$4 sm:$0xff]   ;;  %v1981_v56 = vld [vmem:[%s2628_s1 + $0x588] ss:$16 sps:$4 sm:$0xff]  }
  0x77   :  { %1272 = vmatpush1.bf16.msra.mxu0 %v1885_v57  ;;  %1401 = vmatpush1.bf16.msra.mxu1 %v1888_v58  ;;  %v1986_v57 = vld [vmem:[%s2628_s1 + $0x5a4] ss:$16 sps:$4 sm:$0xff]   ;;  %v1989_v58 = vld [vmem:[%s2628_s1 + $0x5ac] ss:$16 sps:$4 sm:$0xff]  }
  0x78   :  { %1273 = vmatprep.subr.bf16.mxu0 %v1893_v59  ;;  %1402 = vmatprep.subr.bf16.mxu1 %v1896_v60  ;;  %v1984_v59 = vld [vmem:[%s2628_s1 + $0x5a0] ss:$16 sps:$4 sm:$0xff]   ;;  %v1987_v60 = vld [vmem:[%s2628_s1 + $0x5a8] ss:$16 sps:$4 sm:$0xff]  }
  0x7b   :  { %1274 = vmatpush1.bf16.msra.mxu0 %v1891_v61  ;;  %1403 = vmatpush1.bf16.msra.mxu1 %v1894_v62  ;;  %v1992_v61 = vld [vmem:[%s2628_s1 + $0x5c4] ss:$16 sps:$4 sm:$0xff]   ;;  %v1995_v62 = vld [vmem:[%s2628_s1 + $0x5cc] ss:$16 sps:$4 sm:$0xff]  }
  0x7c   :  { %1275 = vmatprep.subr.bf16.mxu0 %v1899_v63  ;;  %1404 = vmatprep.subr.bf16.mxu1 %v1902_v0  ;;  %v1990_v63 = vld [vmem:[%s2628_s1 + $0x5c0] ss:$16 sps:$4 sm:$0xff]   ;;  %v1993_v0 = vld [vmem:[%s2628_s1 + $0x5c8] ss:$16 sps:$4 sm:$0xff]  }
  0x7f   :  { %1276 = vmatpush1.bf16.msra.mxu0 %v1897_v1  ;;  %1405 = vmatpush1.bf16.msra.mxu1 %v1900_v2  ;;  %v1998_v1 = vld [vmem:[%s2628_s1 + $0x5e4] ss:$16 sps:$4 sm:$0xff]   ;;  %v2001_v2 = vld [vmem:[%s2628_s1 + $0x5ec] ss:$16 sps:$4 sm:$0xff]  }
  0x80   :  { %1288 = vmatprep.subr.bf16.mxu0 %v1908_v3  ;;  %1417 = vmatprep.subr.bf16.mxu1 %v1911_v4  ;;  %v1996_v3 = vld [vmem:[%s2628_s1 + $0x5e0] ss:$16 sps:$4 sm:$0xff]   ;;  %v1999_v4 = vld [vmem:[%s2628_s1 + $0x5e8] ss:$16 sps:$4 sm:$0xff]  }
  0x82   :  { %1278 = vmatmul.mubr.bf16.vlgmr.msra.gmra.mrb[0].mxu0 %v1903_v5  ;;  %1407 = vmatmul.mubr.bf16.vlgmr.msra.gmra.mrb[0].mxu1 %v1903_v5  ;;  %v2002_v5 = vld [vmem:[%s2629_s0 + $0x10] ss:$24 sps:$4 sm:$0x1f]  }
  0x83   :  { %1289 = vmatpush1.bf16.msra.mxu0 %v1906_v6  ;;  %1418 = vmatpush1.bf16.msra.mxu1 %v1909_v7 }
  0x84   :  { %1290 = vmatprep.subr.bf16.mxu0 %v1914_v8  ;;  %1419 = vmatprep.subr.bf16.mxu1 %v1917_v9 }
  0x85   :  { %1320 = vmatprep.mubr.bf16.mxu0 %v2004_v12  ;;  %1449 = vmatprep.mubr.bf16.mxu1 %v2004_v12 }
  0x87   :  { %1291 = vmatpush1.bf16.msra.mxu0 %v1912_v10  ;;  %1420 = vmatpush1.bf16.msra.mxu1 %v1915_v11 }
  0x88   :  { %1292 = vmatprep.subr.bf16.mxu0 %v1920_v13  ;;  %1421 = vmatprep.subr.bf16.mxu1 %v1923_v14  ;;  %v1687_v14 = vld [vmem:[%s2630_s2] ss:$0 sm:$0xff] }
  0x8b   :  { %1293 = vmatpush1.bf16.msra.mxu0 %v1918_v15  ;;  %1422 = vmatpush1.bf16.msra.mxu1 %v1921_v16 }
  0x8c   :  { %1294 = vmatprep.subr.bf16.mxu0 %v1926_v17  ;;  %1423 = vmatprep.subr.bf16.mxu1 %v1929_v18 }
  0x8f   :  { %1295 = vmatpush1.bf16.msra.mxu0 %v1924_v19  ;;  %1424 = vmatpush1.bf16.msra.mxu1 %v1927_v20 }
  0x90   :  { %1296 = vmatprep.subr.bf16.mxu0 %v1932_v21  ;;  %1425 = vmatprep.subr.bf16.mxu1 %v1935_v22 }
  0x93   :  { %1297 = vmatpush1.bf16.msra.mxu0 %v1930_v23  ;;  %1426 = vmatpush1.bf16.msra.mxu1 %v1933_v24 }
  0x94   :  { %1298 = vmatprep.subr.bf16.mxu0 %v1938_v25  ;;  %1427 = vmatprep.subr.bf16.mxu1 %v1941_v26 }
  0x97   :  { %1299 = vmatpush1.bf16.msra.mxu0 %v1936_v27  ;;  %1428 = vmatpush1.bf16.msra.mxu1 %v1939_v28 }
  0x98   :  { %1300 = vmatprep.subr.bf16.mxu0 %v1944_v29  ;;  %1429 = vmatprep.subr.bf16.mxu1 %v1947_v30 }
  0x9b   :  { %1301 = vmatpush1.bf16.msra.mxu0 %v1942_v31  ;;  %1430 = vmatpush1.bf16.msra.mxu1 %v1945_v32 }
  0x9c   :  { %1302 = vmatprep.subr.bf16.mxu0 %v1950_v33  ;;  %1431 = vmatprep.subr.bf16.mxu1 %v1953_v34 }
  0x9f   :  { %1303 = vmatpush1.bf16.msra.mxu0 %v1948_v35  ;;  %1432 = vmatpush1.bf16.msra.mxu1 %v1951_v36 }
  0xa0   :  { %1304 = vmatprep.subr.bf16.mxu0 %v1956_v37  ;;  %1433 = vmatprep.subr.bf16.mxu1 %v1959_v38 }
  0xa3   :  { %1305 = vmatpush1.bf16.msra.mxu0 %v1954_v39  ;;  %1434 = vmatpush1.bf16.msra.mxu1 %v1957_v40 }
  0xa4   :  { %1306 = vmatprep.subr.bf16.mxu0 %v1962_v41  ;;  %1435 = vmatprep.subr.bf16.mxu1 %v1965_v42 }
  0xa7   :  { %1307 = vmatpush1.bf16.msra.mxu0 %v1960_v43  ;;  %1436 = vmatpush1.bf16.msra.mxu1 %v1963_v44 }
  0xa8   :  { %1308 = vmatprep.subr.bf16.mxu0 %v1968_v45  ;;  %1437 = vmatprep.subr.bf16.mxu1 %v1971_v46 }
  0xab   :  { %1309 = vmatpush1.bf16.msra.mxu0 %v1966_v47  ;;  %1438 = vmatpush1.bf16.msra.mxu1 %v1969_v48 }
  0xac   :  { %1310 = vmatprep.subr.bf16.mxu0 %v1974_v49  ;;  %1439 = vmatprep.subr.bf16.mxu1 %v1977_v50 }
  0xaf   :  { %1311 = vmatpush1.bf16.msra.mxu0 %v1972_v51  ;;  %1440 = vmatpush1.bf16.msra.mxu1 %v1975_v52 }
  0xb0   :  { %1312 = vmatprep.subr.bf16.mxu0 %v1980_v53  ;;  %1441 = vmatprep.subr.bf16.mxu1 %v1983_v54 }
  0xb3   :  { %1313 = vmatpush1.bf16.msra.mxu0 %v1978_v55  ;;  %1442 = vmatpush1.bf16.msra.mxu1 %v1981_v56 }
  0xb4   :  { %1314 = vmatprep.subr.bf16.mxu0 %v1986_v57  ;;  %1443 = vmatprep.subr.bf16.mxu1 %v1989_v58 }
  0xb7   :  { %1315 = vmatpush1.bf16.msra.mxu0 %v1984_v59  ;;  %1444 = vmatpush1.bf16.msra.mxu1 %v1987_v60 }
  0xb8   :  { %1316 = vmatprep.subr.bf16.mxu0 %v1992_v61  ;;  %1445 = vmatprep.subr.bf16.mxu1 %v1995_v62 }
  0xbb   :  { %1317 = vmatpush1.bf16.msra.mxu0 %v1990_v63  ;;  %1446 = vmatpush1.bf16.msra.mxu1 %v1993_v0 }
  0xbc   :  { %1318 = vmatprep.subr.bf16.mxu0 %v1998_v1  ;;  %1447 = vmatprep.subr.bf16.mxu1 %v2001_v2 }
  0xbf   :  { %1319 = vmatpush1.bf16.msra.mxu0 %v1996_v3  ;;  %1448 = vmatpush1.bf16.msra.mxu1 %v1999_v4 }
  0xc2   :  { %1321 = vmatmul.mubr.bf16.vlgmr.msra.gmra.mrb[0].mxu0 %v2002_v5  ;;  %1450 = vmatmul.mubr.bf16.vlgmr.msra.gmra.mrb[0].mxu1 %v2002_v5 }
 0x195   :  { %v1322_v6 = vpop.f32.mrb[0].mxu0  ;;  %v1451_v7 = vpop.f32.mrb[0].mxu1 }
 0x196   :  { %v1324_v8 = vpop.f32.mrb[1].mxu0  ;;  %v1453_v9 = vpop.f32.mrb[1].mxu1 }
 0x197   :  { %v1460_v10 = vmax.f32 %v1322_v6, %v1324_v8  ;;  %v1462_v11 = vmax.f32 %v1451_v7, %v1453_v9  ;;  %v1326_v12 = vpop.f32.mrb[2].mxu0  ;;  %v1455_v13 = vpop.f32.mrb[2].mxu1 }
 0x198   :  { %v1328_v15 = vpop.f32.mrb[3].mxu0  ;;  %v1457_v16 = vpop.f32.mrb[3].mxu1 }
 0x199   :  { %v1464_v17 = vmax.f32 %v1460_v10, %v1462_v11  ;;  %v1461_v18 = vmax.f32 %v1326_v12, %v1328_v15  ;;  %v1463_v19 = vmax.f32 %v1455_v13, %v1457_v16 }
 0x19b   :  { %v1473_v20 = vadd.f32 %v1687_v14, %v1464_v17  ;;  %v1465_v21 = vmax.f32 %v1461_v18, %v1463_v19 }
 0x19d   :  { %v1690_v22 = vpack.c.bf16 %v1473_v20, %v1473_v20  ;;  %v1474_v23 = vadd.f32 %v1687_v14, %v1465_v21 }
 0x19f   :  { %1483 = vst [vmem:[%s2631_s3] sm:$0xf] %v1690_v22  ;;  %v1691_v24 = vpack.c.bf16 %v1474_v23, %v1474_v23 }
 0x1a1   :  { %1484 = vst [vmem:[%s2631_s3 + $0x4] sm:$0x1] %v1691_v24 }

</bundles_post_ra>
